<compile_context>
chip_gen: v6e
topology: v6e:2x2x1
jax: 0.10.0
libtpu: 0.0.40
codegen_flags: <defaults>
</compile_context>

<pallas_src>
import functools

import jax
import jax.numpy as jnp
from jax.experimental import pallas as pl
from jax.experimental.pallas import tpu as pltpu


# ----------------------------------------------------------------------------
# Model dimensions (from the PyTorch module) and TPU-friendly padded sizes.
# ----------------------------------------------------------------------------
DIN = 4          # LSTM input size
HIDDEN = 100     # LSTM hidden size / fc width
OUT = 4          # fc2 output size

DIN_PAD = 128    # lane-dense K for the input projection
H_PAD = 128      # lane-dense hidden
OUT_PAD = 128    # lane-dense fc2 output (sliced back to 4 afterwards)

# Kernel gate slot -> PyTorch gate index.  PyTorch packs [i | f | g | o];
# the kernel uses [i | f | o | g] so the three sigmoid gates are contiguous.
_GATE_SLOTS = (0, 1, 3, 2)


def _round_up(x, m):
    return ((x + m - 1) // m) * m


def _sigmoid(x):
    # Exact identity; one EUP tanh push instead of exp + reciprocal/divide.
    return 0.5 * jnp.tanh(0.5 * x) + 0.5


# ----------------------------------------------------------------------------
# Fused Pallas kernel: LSTM (all timesteps) + last-hidden + fc/ReLU + fc2/ReLU
# ----------------------------------------------------------------------------
def _lstm_fc_kernel(x_ref, w_ih_ref, w_hh_ref, b_ref,
                    fc1w_ref, fc1b_ref, fc2w_ref, fc2b_ref,
                    o_ref, *, seq_len, b_pad, h_pad):
    # Input projection for ALL timesteps in one lane-dense MXU matmul:
    # (T*b_pad, 128) @ (128, 512) + bias  -> (T*b_pad, 512)
    gx = jnp.dot(x_ref[...], w_ih_ref[...],
                 preferred_element_type=jnp.float32) + b_ref[...]

    w_hh = w_hh_ref[...]                       # loop-invariant recurrent weight
    h = jnp.zeros((b_pad, h_pad), jnp.float32)
    c = jnp.zeros((b_pad, h_pad), jnp.float32)

    # Static unroll over the (small, fixed) sequence length.
    # Gate layout per step: [ i | f | o | g ], each h_pad lanes wide.
    for t in range(seq_len):
        gates = gx[t * b_pad:(t + 1) * b_pad, :] + jnp.dot(
            h, w_hh, preferred_element_type=jnp.float32)
        sig = _sigmoid(gates[:, :3 * h_pad])   # i, f, o as one contiguous slab
        i_g = sig[:, 0 * h_pad:1 * h_pad]
        f_g = sig[:, 1 * h_pad:2 * h_pad]
        o_g = sig[:, 2 * h_pad:3 * h_pad]
        g_g = jnp.tanh(gates[:, 3 * h_pad:4 * h_pad])
        c = f_g * c + i_g * g_g
        h = o_g * jnp.tanh(c)

    # FC heads as a fused epilogue (h stays in VMEM/vregs).
    z1 = jnp.maximum(
        jnp.dot(h, fc1w_ref[...], preferred_element_type=jnp.float32)
        + fc1b_ref[...], 0.0)
    z2 = jnp.maximum(
        jnp.dot(z1, fc2w_ref[...], preferred_element_type=jnp.float32)
        + fc2b_ref[...], 0.0)
    o_ref[...] = z2.astype(o_ref.dtype)


# ----------------------------------------------------------------------------
# Parameter preparation (one-time): pad / transpose / reorder to kernel layout.
# PyTorch layouts: weight_ih (4H, Din), weight_hh (4H, H), biases (4H,),
#                  fc (H, H), fc2 (OUT, H) with gate order [i | f | g | o].
# ----------------------------------------------------------------------------
def prepare_params(p):
    H, Hp = HIDDEN, H_PAD
    w_ih = jnp.zeros((DIN_PAD, 4 * Hp), jnp.float32)
    w_hh = jnp.zeros((Hp, 4 * Hp), jnp.float32)
    b_g = jnp.zeros((1, 4 * Hp), jnp.float32)
    for slot, g in enumerate(_GATE_SLOTS):
        w_ih = w_ih.at[:DIN, slot * Hp:slot * Hp + H].set(
            p["w_ih"][g * H:(g + 1) * H, :].T)
        w_hh = w_hh.at[:H, slot * Hp:slot * Hp + H].set(
            p["w_hh"][g * H:(g + 1) * H, :].T)
        b_g = b_g.at[0, slot * Hp:slot * Hp + H].set(
            p["b_ih"][g * H:(g + 1) * H] + p["b_hh"][g * H:(g + 1) * H])
    fc1_w = jnp.zeros((Hp, Hp), jnp.float32).at[:H, :H].set(p["fc_w"].T)
    fc1_b = jnp.zeros((1, Hp), jnp.float32).at[0, :H].set(p["fc_b"])
    fc2_w = jnp.zeros((Hp, OUT_PAD), jnp.float32).at[:H, :OUT].set(p["fc2_w"].T)
    fc2_b = jnp.zeros((1, OUT_PAD), jnp.float32).at[0, :OUT].set(p["fc2_b"])
    return (w_ih, w_hh, b_g, fc1_w, fc1_b, fc2_w, fc2_b)


# ----------------------------------------------------------------------------
# Forward pass (matches NewSeqClassifier.forward) -- fully jitted.
# ----------------------------------------------------------------------------
@jax.jit
def new_seq_classifier_forward(x1, x2, x3, kparams):
    B, T, Din = x1.shape
    assert Din == DIN
    n_seq = 3
    bt = n_seq * B
    b_pad = _round_up(bt, 8)

    # Batch the three sequences along rows (LSTM weights are shared), go
    # time-major, and pad rows->b_pad / lanes->128.  All of this fuses into
    # the same XLA executable as the pallas_call (single dispatch).
    xs = jnp.stack([x1, x2, x3], axis=0)                       # (3, B, T, Din)
    xs = jnp.transpose(xs, (2, 0, 1, 3)).reshape(T, bt, Din)   # (T, 3B, Din)
    xs = jnp.pad(xs, ((0, 0), (0, b_pad - bt), (0, DIN_PAD - Din)))
    xflat = xs.reshape(T * b_pad, DIN_PAD).astype(jnp.float32)

    kernel = functools.partial(
        _lstm_fc_kernel, seq_len=T, b_pad=b_pad, h_pad=H_PAD)

    vmem_specs = [pl.BlockSpec(memory_space=pltpu.MemorySpace.VMEM)
                  for _ in range(8)]
    out = pl.pallas_call(
        kernel,
        out_shape=jax.ShapeDtypeStruct((b_pad, OUT_PAD), jnp.float32),
        in_specs=vmem_specs,
        out_specs=pl.BlockSpec(memory_space=pltpu.MemorySpace.VMEM),
    )(xflat, *kparams)

    out = out[:bt, :OUT]                                  # (3B, 4) real rows/cols
    out = out.reshape(n_seq, B, OUT)                      # (3, B, 4)
    return jnp.transpose(out, (1, 0, 2))                  # (B, 3, 4)


# ----------------------------------------------------------------------------
# Pure-JAX reference (for correctness check only)
# ----------------------------------------------------------------------------
def reference_forward(x1, x2, x3, params):
    H = HIDDEN
    w_ih, w_hh = params["w_ih"], params["w_hh"]
    bias = params["b_ih"] + params["b_hh"]

    def lstm_last_h(x):                                   # x: (B, T, Din)
        def step(carry, x_t):
            h, c = carry
            gates = x_t @ w_ih.T + h @ w_hh.T + bias
            i = jax.nn.sigmoid(gates[:, 0 * H:1 * H])
            f = jax.nn.sigmoid(gates[:, 1 * H:2 * H])
            g = jnp.tanh(gates[:, 2 * H:3 * H])
            o = jax.nn.sigmoid(gates[:, 3 * H:4 * H])
            c = f * c + i * g
            h = o * jnp.tanh(c)
            return (h, c), None
        B = x.shape[0]
        init = (jnp.zeros((B, H), jnp.float32), jnp.zeros((B, H), jnp.float32))
        (h, _), _ = jax.lax.scan(step, init, jnp.transpose(x, (1, 0, 2)))
        return h

    def head(x):
        h = lstm_last_h(x)
        z1 = jax.nn.relu(h @ params["fc_w"].T + params["fc_b"])
        z2 = jax.nn.relu(z1 @ params["fc2_w"].T + params["fc2_b"])
        return z2[:, None, :]

    return jnp.concatenate([head(x1), head(x2), head(x3)], axis=1)


# ----------------------------------------------------------------------------
# Main
# ----------------------------------------------------------------------------
def make_params(key):
    ks = jax.random.split(key, 8)

    def n(k, shape, scale=0.1):
        return scale * jax.random.normal(k, shape, jnp.float32)

    return {
        "w_ih": n(ks[0], (4 * HIDDEN, DIN)),
        "w_hh": n(ks[1], (4 * HIDDEN, HIDDEN)),
        "b_ih": n(ks[2], (4 * HIDDEN,)),
        "b_hh": n(ks[3], (4 * HIDDEN,)),
        "fc_w": n(ks[4], (HIDDEN, HIDDEN)),
        "fc_b": n(ks[5], (HIDDEN,)),
        "fc2_w": n(ks[6], (OUT, HIDDEN)),
        "fc2_b": n(ks[7], (OUT,)),
    }


if __name__ == "__main__":
    root = jax.random.PRNGKey(0)
    kp, k1, k2, k3 = jax.random.split(root, 4)
    params = make_params(kp)

    B, T = 2, 8
    x1 = jax.random.normal(k1, (B, T, DIN), jnp.float32)
    x2 = jax.random.normal(k2, (B, T, DIN), jnp.float32)
    x3 = jax.random.normal(k3, (B, T, DIN), jnp.float32)

    kparams = prepare_params(params)            # one-time weight padding/transpose

    out = new_seq_classifier_forward(x1, x2, x3, kparams)
    out = jax.block_until_ready(out)
    assert out.shape == (B, 3, OUT), out.shape

    ref = jax.block_until_ready(reference_forward(x1, x2, x3, params))
    assert jnp.allclose(out, ref, atol=1e-4, rtol=1e-4), (
        float(jnp.max(jnp.abs(out - ref))))

    print("KERNEL_OK")
</pallas_src>

<mosaic_0001>
module attributes {stable_mosaic.version = 11 : i64} {
  func.func @_lstm_fc_kernel(%arg0: memref<64x128xf32, #tpu.memory_space<vmem>>, %arg1: memref<128x512xf32, #tpu.memory_space<vmem>>, %arg2: memref<128x512xf32, #tpu.memory_space<vmem>>, %arg3: memref<1x512xf32, #tpu.memory_space<vmem>>, %arg4: memref<128x128xf32, #tpu.memory_space<vmem>>, %arg5: memref<1x128xf32, #tpu.memory_space<vmem>>, %arg6: memref<128x128xf32, #tpu.memory_space<vmem>>, %arg7: memref<1x128xf32, #tpu.memory_space<vmem>>, %arg8: memref<8x128xf32, #tpu.memory_space<vmem>>) attributes {dimension_semantics = [], scalar_prefetch = 0 : i64, scratch_operands = 0 : i64, tpu.core_type = #tpu.core_type<tc>} {
    %c0 = arith.constant 0 : index
    %c0_0 = arith.constant 0 : index
    %0 = vector.load %arg0[%c0, %c0_0] : memref<64x128xf32, #tpu.memory_space<vmem>>, vector<64x128xf32>
    %c0_1 = arith.constant 0 : index
    %c0_2 = arith.constant 0 : index
    %1 = vector.load %arg1[%c0_1, %c0_2] : memref<128x512xf32, #tpu.memory_space<vmem>>, vector<128x512xf32>
    %cst = arith.constant dense<0.000000e+00> : vector<64x512xf32>
    %2 = tpu.matmul %0, %1, %cst {dimension_numbers = #tpu.dot_dimension_numbers<[1], [0], [0], [1], [0, 0, 1, 1], [], []>} : vector<64x128xf32>, vector<128x512xf32>, vector<64x512xf32> -> vector<64x512xf32>
    %c0_3 = arith.constant 0 : index
    %c0_4 = arith.constant 0 : index
    %3 = vector.load %arg3[%c0_3, %c0_4] : memref<1x512xf32, #tpu.memory_space<vmem>>, vector<1x512xf32>
    %4 = vector.broadcast %3 : vector<1x512xf32> to vector<64x512xf32>
    %5 = arith.addf %2, %4 : vector<64x512xf32>
    %c0_5 = arith.constant 0 : index
    %c0_6 = arith.constant 0 : index
    %6 = vector.load %arg2[%c0_5, %c0_6] : memref<128x512xf32, #tpu.memory_space<vmem>>, vector<128x512xf32>
    %cst_7 = arith.constant 0.000000e+00 : f32
    %7 = vector.broadcast %cst_7 : f32 to vector<8x128xf32>
    %cst_8 = arith.constant 0.000000e+00 : f32
    %8 = vector.broadcast %cst_8 : f32 to vector<8x128xf32>
    %9 = vector.extract_strided_slice %5 {offsets = [0, 0], sizes = [8, 512], strides = [1, 1]} : vector<64x512xf32> to vector<8x512xf32>
    %cst_9 = arith.constant dense<0.000000e+00> : vector<8x512xf32>
    %10 = tpu.matmul %7, %6, %cst_9 {dimension_numbers = #tpu.dot_dimension_numbers<[1], [0], [0], [1], [0, 0, 1, 1], [], []>} : vector<8x128xf32>, vector<128x512xf32>, vector<8x512xf32> -> vector<8x512xf32>
    %11 = arith.addf %9, %10 : vector<8x512xf32>
    %12 = vector.extract_strided_slice %11 {offsets = [0, 0], sizes = [8, 384], strides = [1, 1]} : vector<8x512xf32> to vector<8x384xf32>
    %cst_10 = arith.constant 5.000000e-01 : f32
    %13 = vector.broadcast %cst_10 : f32 to vector<8x384xf32>
    %14 = arith.mulf %13, %12 : vector<8x384xf32>
    %15 = math.tanh %14 : vector<8x384xf32>
    %cst_11 = arith.constant 5.000000e-01 : f32
    %16 = vector.broadcast %cst_11 : f32 to vector<8x384xf32>
    %17 = arith.mulf %16, %15 : vector<8x384xf32>
    %cst_12 = arith.constant 5.000000e-01 : f32
    %18 = vector.broadcast %cst_12 : f32 to vector<8x384xf32>
    %19 = arith.addf %17, %18 : vector<8x384xf32>
    %20 = vector.extract_strided_slice %19 {offsets = [0, 0], sizes = [8, 128], strides = [1, 1]} : vector<8x384xf32> to vector<8x128xf32>
    %21 = vector.extract_strided_slice %19 {offsets = [0, 128], sizes = [8, 128], strides = [1, 1]} : vector<8x384xf32> to vector<8x128xf32>
    %22 = vector.extract_strided_slice %19 {offsets = [0, 256], sizes = [8, 128], strides = [1, 1]} : vector<8x384xf32> to vector<8x128xf32>
    %23 = vector.extract_strided_slice %11 {offsets = [0, 384], sizes = [8, 128], strides = [1, 1]} : vector<8x512xf32> to vector<8x128xf32>
    %24 = math.tanh %23 : vector<8x128xf32>
    %25 = arith.mulf %21, %8 : vector<8x128xf32>
    %26 = arith.mulf %20, %24 : vector<8x128xf32>
    %27 = arith.addf %25, %26 : vector<8x128xf32>
    %28 = math.tanh %27 : vector<8x128xf32>
    %29 = arith.mulf %22, %28 : vector<8x128xf32>
    %30 = vector.extract_strided_slice %5 {offsets = [8, 0], sizes = [8, 512], strides = [1, 1]} : vector<64x512xf32> to vector<8x512xf32>
    %cst_13 = arith.constant dense<0.000000e+00> : vector<8x512xf32>
    %31 = tpu.matmul %29, %6, %cst_13 {dimension_numbers = #tpu.dot_dimension_numbers<[1], [0], [0], [1], [0, 0, 1, 1], [], []>} : vector<8x128xf32>, vector<128x512xf32>, vector<8x512xf32> -> vector<8x512xf32>
    %32 = arith.addf %30, %31 : vector<8x512xf32>
    %33 = vector.extract_strided_slice %32 {offsets = [0, 0], sizes = [8, 384], strides = [1, 1]} : vector<8x512xf32> to vector<8x384xf32>
    %cst_14 = arith.constant 5.000000e-01 : f32
    %34 = vector.broadcast %cst_14 : f32 to vector<8x384xf32>
    %35 = arith.mulf %34, %33 : vector<8x384xf32>
    %36 = math.tanh %35 : vector<8x384xf32>
    %cst_15 = arith.constant 5.000000e-01 : f32
    %37 = vector.broadcast %cst_15 : f32 to vector<8x384xf32>
    %38 = arith.mulf %37, %36 : vector<8x384xf32>
    %cst_16 = arith.constant 5.000000e-01 : f32
    %39 = vector.broadcast %cst_16 : f32 to vector<8x384xf32>
    %40 = arith.addf %38, %39 : vector<8x384xf32>
    %41 = vector.extract_strided_slice %40 {offsets = [0, 0], sizes = [8, 128], strides = [1, 1]} : vector<8x384xf32> to vector<8x128xf32>
    %42 = vector.extract_strided_slice %40 {offsets = [0, 128], sizes = [8, 128], strides = [1, 1]} : vector<8x384xf32> to vector<8x128xf32>
    %43 = vector.extract_strided_slice %40 {offsets = [0, 256], sizes = [8, 128], strides = [1, 1]} : vector<8x384xf32> to vector<8x128xf32>
    %44 = vector.extract_strided_slice %32 {offsets = [0, 384], sizes = [8, 128], strides = [1, 1]} : vector<8x512xf32> to vector<8x128xf32>
    %45 = math.tanh %44 : vector<8x128xf32>
    %46 = arith.mulf %42, %27 : vector<8x128xf32>
    %47 = arith.mulf %41, %45 : vector<8x128xf32>
    %48 = arith.addf %46, %47 : vector<8x128xf32>
    %49 = math.tanh %48 : vector<8x128xf32>
    %50 = arith.mulf %43, %49 : vector<8x128xf32>
    %51 = vector.extract_strided_slice %5 {offsets = [16, 0], sizes = [8, 512], strides = [1, 1]} : vector<64x512xf32> to vector<8x512xf32>
    %cst_17 = arith.constant dense<0.000000e+00> : vector<8x512xf32>
    %52 = tpu.matmul %50, %6, %cst_17 {dimension_numbers = #tpu.dot_dimension_numbers<[1], [0], [0], [1], [0, 0, 1, 1], [], []>} : vector<8x128xf32>, vector<128x512xf32>, vector<8x512xf32> -> vector<8x512xf32>
    %53 = arith.addf %51, %52 : vector<8x512xf32>
    %54 = vector.extract_strided_slice %53 {offsets = [0, 0], sizes = [8, 384], strides = [1, 1]} : vector<8x512xf32> to vector<8x384xf32>
    %cst_18 = arith.constant 5.000000e-01 : f32
    %55 = vector.broadcast %cst_18 : f32 to vector<8x384xf32>
    %56 = arith.mulf %55, %54 : vector<8x384xf32>
    %57 = math.tanh %56 : vector<8x384xf32>
    %cst_19 = arith.constant 5.000000e-01 : f32
    %58 = vector.broadcast %cst_19 : f32 to vector<8x384xf32>
    %59 = arith.mulf %58, %57 : vector<8x384xf32>
    %cst_20 = arith.constant 5.000000e-01 : f32
    %60 = vector.broadcast %cst_20 : f32 to vector<8x384xf32>
    %61 = arith.addf %59, %60 : vector<8x384xf32>
    %62 = vector.extract_strided_slice %61 {offsets = [0, 0], sizes = [8, 128], strides = [1, 1]} : vector<8x384xf32> to vector<8x128xf32>
    %63 = vector.extract_strided_slice %61 {offsets = [0, 128], sizes = [8, 128], strides = [1, 1]} : vector<8x384xf32> to vector<8x128xf32>
    %64 = vector.extract_strided_slice %61 {offsets = [0, 256], sizes = [8, 128], strides = [1, 1]} : vector<8x384xf32> to vector<8x128xf32>
    %65 = vector.extract_strided_slice %53 {offsets = [0, 384], sizes = [8, 128], strides = [1, 1]} : vector<8x512xf32> to vector<8x128xf32>
    %66 = math.tanh %65 : vector<8x128xf32>
    %67 = arith.mulf %63, %48 : vector<8x128xf32>
    %68 = arith.mulf %62, %66 : vector<8x128xf32>
    %69 = arith.addf %67, %68 : vector<8x128xf32>
    %70 = math.tanh %69 : vector<8x128xf32>
    %71 = arith.mulf %64, %70 : vector<8x128xf32>
    %72 = vector.extract_strided_slice %5 {offsets = [24, 0], sizes = [8, 512], strides = [1, 1]} : vector<64x512xf32> to vector<8x512xf32>
    %cst_21 = arith.constant dense<0.000000e+00> : vector<8x512xf32>
    %73 = tpu.matmul %71, %6, %cst_21 {dimension_numbers = #tpu.dot_dimension_numbers<[1], [0], [0], [1], [0, 0, 1, 1], [], []>} : vector<8x128xf32>, vector<128x512xf32>, vector<8x512xf32> -> vector<8x512xf32>
    %74 = arith.addf %72, %73 : vector<8x512xf32>
    %75 = vector.extract_strided_slice %74 {offsets = [0, 0], sizes = [8, 384], strides = [1, 1]} : vector<8x512xf32> to vector<8x384xf32>
    %cst_22 = arith.constant 5.000000e-01 : f32
    %76 = vector.broadcast %cst_22 : f32 to vector<8x384xf32>
    %77 = arith.mulf %76, %75 : vector<8x384xf32>
    %78 = math.tanh %77 : vector<8x384xf32>
    %cst_23 = arith.constant 5.000000e-01 : f32
    %79 = vector.broadcast %cst_23 : f32 to vector<8x384xf32>
    %80 = arith.mulf %79, %78 : vector<8x384xf32>
    %cst_24 = arith.constant 5.000000e-01 : f32
    %81 = vector.broadcast %cst_24 : f32 to vector<8x384xf32>
    %82 = arith.addf %80, %81 : vector<8x384xf32>
    %83 = vector.extract_strided_slice %82 {offsets = [0, 0], sizes = [8, 128], strides = [1, 1]} : vector<8x384xf32> to vector<8x128xf32>
    %84 = vector.extract_strided_slice %82 {offsets = [0, 128], sizes = [8, 128], strides = [1, 1]} : vector<8x384xf32> to vector<8x128xf32>
    %85 = vector.extract_strided_slice %82 {offsets = [0, 256], sizes = [8, 128], strides = [1, 1]} : vector<8x384xf32> to vector<8x128xf32>
    %86 = vector.extract_strided_slice %74 {offsets = [0, 384], sizes = [8, 128], strides = [1, 1]} : vector<8x512xf32> to vector<8x128xf32>
    %87 = math.tanh %86 : vector<8x128xf32>
    %88 = arith.mulf %84, %69 : vector<8x128xf32>
    %89 = arith.mulf %83, %87 : vector<8x128xf32>
    %90 = arith.addf %88, %89 : vector<8x128xf32>
    %91 = math.tanh %90 : vector<8x128xf32>
    %92 = arith.mulf %85, %91 : vector<8x128xf32>
    %93 = vector.extract_strided_slice %5 {offsets = [32, 0], sizes = [8, 512], strides = [1, 1]} : vector<64x512xf32> to vector<8x512xf32>
    %cst_25 = arith.constant dense<0.000000e+00> : vector<8x512xf32>
    %94 = tpu.matmul %92, %6, %cst_25 {dimension_numbers = #tpu.dot_dimension_numbers<[1], [0], [0], [1], [0, 0, 1, 1], [], []>} : vector<8x128xf32>, vector<128x512xf32>, vector<8x512xf32> -> vector<8x512xf32>
    %95 = arith.addf %93, %94 : vector<8x512xf32>
    %96 = vector.extract_strided_slice %95 {offsets = [0, 0], sizes = [8, 384], strides = [1, 1]} : vector<8x512xf32> to vector<8x384xf32>
    %cst_26 = arith.constant 5.000000e-01 : f32
    %97 = vector.broadcast %cst_26 : f32 to vector<8x384xf32>
    %98 = arith.mulf %97, %96 : vector<8x384xf32>
    %99 = math.tanh %98 : vector<8x384xf32>
    %cst_27 = arith.constant 5.000000e-01 : f32
    %100 = vector.broadcast %cst_27 : f32 to vector<8x384xf32>
    %101 = arith.mulf %100, %99 : vector<8x384xf32>
    %cst_28 = arith.constant 5.000000e-01 : f32
    %102 = vector.broadcast %cst_28 : f32 to vector<8x384xf32>
    %103 = arith.addf %101, %102 : vector<8x384xf32>
    %104 = vector.extract_strided_slice %103 {offsets = [0, 0], sizes = [8, 128], strides = [1, 1]} : vector<8x384xf32> to vector<8x128xf32>
    %105 = vector.extract_strided_slice %103 {offsets = [0, 128], sizes = [8, 128], strides = [1, 1]} : vector<8x384xf32> to vector<8x128xf32>
    %106 = vector.extract_strided_slice %103 {offsets = [0, 256], sizes = [8, 128], strides = [1, 1]} : vector<8x384xf32> to vector<8x128xf32>
    %107 = vector.extract_strided_slice %95 {offsets = [0, 384], sizes = [8, 128], strides = [1, 1]} : vector<8x512xf32> to vector<8x128xf32>
    %108 = math.tanh %107 : vector<8x128xf32>
    %109 = arith.mulf %105, %90 : vector<8x128xf32>
    %110 = arith.mulf %104, %108 : vector<8x128xf32>
    %111 = arith.addf %109, %110 : vector<8x128xf32>
    %112 = math.tanh %111 : vector<8x128xf32>
    %113 = arith.mulf %106, %112 : vector<8x128xf32>
    %114 = vector.extract_strided_slice %5 {offsets = [40, 0], sizes = [8, 512], strides = [1, 1]} : vector<64x512xf32> to vector<8x512xf32>
    %cst_29 = arith.constant dense<0.000000e+00> : vector<8x512xf32>
    %115 = tpu.matmul %113, %6, %cst_29 {dimension_numbers = #tpu.dot_dimension_numbers<[1], [0], [0], [1], [0, 0, 1, 1], [], []>} : vector<8x128xf32>, vector<128x512xf32>, vector<8x512xf32> -> vector<8x512xf32>
    %116 = arith.addf %114, %115 : vector<8x512xf32>
    %117 = vector.extract_strided_slice %116 {offsets = [0, 0], sizes = [8, 384], strides = [1, 1]} : vector<8x512xf32> to vector<8x384xf32>
    %cst_30 = arith.constant 5.000000e-01 : f32
    %118 = vector.broadcast %cst_30 : f32 to vector<8x384xf32>
    %119 = arith.mulf %118, %117 : vector<8x384xf32>
    %120 = math.tanh %119 : vector<8x384xf32>
    %cst_31 = arith.constant 5.000000e-01 : f32
    %121 = vector.broadcast %cst_31 : f32 to vector<8x384xf32>
    %122 = arith.mulf %121, %120 : vector<8x384xf32>
    %cst_32 = arith.constant 5.000000e-01 : f32
    %123 = vector.broadcast %cst_32 : f32 to vector<8x384xf32>
    %124 = arith.addf %122, %123 : vector<8x384xf32>
    %125 = vector.extract_strided_slice %124 {offsets = [0, 0], sizes = [8, 128], strides = [1, 1]} : vector<8x384xf32> to vector<8x128xf32>
    %126 = vector.extract_strided_slice %124 {offsets = [0, 128], sizes = [8, 128], strides = [1, 1]} : vector<8x384xf32> to vector<8x128xf32>
    %127 = vector.extract_strided_slice %124 {offsets = [0, 256], sizes = [8, 128], strides = [1, 1]} : vector<8x384xf32> to vector<8x128xf32>
    %128 = vector.extract_strided_slice %116 {offsets = [0, 384], sizes = [8, 128], strides = [1, 1]} : vector<8x512xf32> to vector<8x128xf32>
    %129 = math.tanh %128 : vector<8x128xf32>
    %130 = arith.mulf %126, %111 : vector<8x128xf32>
    %131 = arith.mulf %125, %129 : vector<8x128xf32>
    %132 = arith.addf %130, %131 : vector<8x128xf32>
    %133 = math.tanh %132 : vector<8x128xf32>
    %134 = arith.mulf %127, %133 : vector<8x128xf32>
    %135 = vector.extract_strided_slice %5 {offsets = [48, 0], sizes = [8, 512], strides = [1, 1]} : vector<64x512xf32> to vector<8x512xf32>
    %cst_33 = arith.constant dense<0.000000e+00> : vector<8x512xf32>
    %136 = tpu.matmul %134, %6, %cst_33 {dimension_numbers = #tpu.dot_dimension_numbers<[1], [0], [0], [1], [0, 0, 1, 1], [], []>} : vector<8x128xf32>, vector<128x512xf32>, vector<8x512xf32> -> vector<8x512xf32>
    %137 = arith.addf %135, %136 : vector<8x512xf32>
    %138 = vector.extract_strided_slice %137 {offsets = [0, 0], sizes = [8, 384], strides = [1, 1]} : vector<8x512xf32> to vector<8x384xf32>
    %cst_34 = arith.constant 5.000000e-01 : f32
    %139 = vector.broadcast %cst_34 : f32 to vector<8x384xf32>
    %140 = arith.mulf %139, %138 : vector<8x384xf32>
    %141 = math.tanh %140 : vector<8x384xf32>
    %cst_35 = arith.constant 5.000000e-01 : f32
    %142 = vector.broadcast %cst_35 : f32 to vector<8x384xf32>
    %143 = arith.mulf %142, %141 : vector<8x384xf32>
    %cst_36 = arith.constant 5.000000e-01 : f32
    %144 = vector.broadcast %cst_36 : f32 to vector<8x384xf32>
    %145 = arith.addf %143, %144 : vector<8x384xf32>
    %146 = vector.extract_strided_slice %145 {offsets = [0, 0], sizes = [8, 128], strides = [1, 1]} : vector<8x384xf32> to vector<8x128xf32>
    %147 = vector.extract_strided_slice %145 {offsets = [0, 128], sizes = [8, 128], strides = [1, 1]} : vector<8x384xf32> to vector<8x128xf32>
    %148 = vector.extract_strided_slice %145 {offsets = [0, 256], sizes = [8, 128], strides = [1, 1]} : vector<8x384xf32> to vector<8x128xf32>
    %149 = vector.extract_strided_slice %137 {offsets = [0, 384], sizes = [8, 128], strides = [1, 1]} : vector<8x512xf32> to vector<8x128xf32>
    %150 = math.tanh %149 : vector<8x128xf32>
    %151 = arith.mulf %147, %132 : vector<8x128xf32>
    %152 = arith.mulf %146, %150 : vector<8x128xf32>
    %153 = arith.addf %151, %152 : vector<8x128xf32>
    %154 = math.tanh %153 : vector<8x128xf32>
    %155 = arith.mulf %148, %154 : vector<8x128xf32>
    %156 = vector.extract_strided_slice %5 {offsets = [56, 0], sizes = [8, 512], strides = [1, 1]} : vector<64x512xf32> to vector<8x512xf32>
    %cst_37 = arith.constant dense<0.000000e+00> : vector<8x512xf32>
    %157 = tpu.matmul %155, %6, %cst_37 {dimension_numbers = #tpu.dot_dimension_numbers<[1], [0], [0], [1], [0, 0, 1, 1], [], []>} : vector<8x128xf32>, vector<128x512xf32>, vector<8x512xf32> -> vector<8x512xf32>
    %158 = arith.addf %156, %157 : vector<8x512xf32>
    %159 = vector.extract_strided_slice %158 {offsets = [0, 0], sizes = [8, 384], strides = [1, 1]} : vector<8x512xf32> to vector<8x384xf32>
    %cst_38 = arith.constant 5.000000e-01 : f32
    %160 = vector.broadcast %cst_38 : f32 to vector<8x384xf32>
    %161 = arith.mulf %160, %159 : vector<8x384xf32>
    %162 = math.tanh %161 : vector<8x384xf32>
    %cst_39 = arith.constant 5.000000e-01 : f32
    %163 = vector.broadcast %cst_39 : f32 to vector<8x384xf32>
    %164 = arith.mulf %163, %162 : vector<8x384xf32>
    %cst_40 = arith.constant 5.000000e-01 : f32
    %165 = vector.broadcast %cst_40 : f32 to vector<8x384xf32>
    %166 = arith.addf %164, %165 : vector<8x384xf32>
    %167 = vector.extract_strided_slice %166 {offsets = [0, 0], sizes = [8, 128], strides = [1, 1]} : vector<8x384xf32> to vector<8x128xf32>
    %168 = vector.extract_strided_slice %166 {offsets = [0, 128], sizes = [8, 128], strides = [1, 1]} : vector<8x384xf32> to vector<8x128xf32>
    %169 = vector.extract_strided_slice %166 {offsets = [0, 256], sizes = [8, 128], strides = [1, 1]} : vector<8x384xf32> to vector<8x128xf32>
    %170 = vector.extract_strided_slice %158 {offsets = [0, 384], sizes = [8, 128], strides = [1, 1]} : vector<8x512xf32> to vector<8x128xf32>
    %171 = math.tanh %170 : vector<8x128xf32>
    %172 = arith.mulf %168, %153 : vector<8x128xf32>
    %173 = arith.mulf %167, %171 : vector<8x128xf32>
    %174 = arith.addf %172, %173 : vector<8x128xf32>
    %175 = math.tanh %174 : vector<8x128xf32>
    %176 = arith.mulf %169, %175 : vector<8x128xf32>
    %c0_41 = arith.constant 0 : index
    %c0_42 = arith.constant 0 : index
    %177 = vector.load %arg4[%c0_41, %c0_42] : memref<128x128xf32, #tpu.memory_space<vmem>>, vector<128x128xf32>
    %cst_43 = arith.constant dense<0.000000e+00> : vector<8x128xf32>
    %178 = tpu.matmul %176, %177, %cst_43 {dimension_numbers = #tpu.dot_dimension_numbers<[1], [0], [0], [1], [0, 0, 1, 1], [], []>} : vector<8x128xf32>, vector<128x128xf32>, vector<8x128xf32> -> vector<8x128xf32>
    %c0_44 = arith.constant 0 : index
    %c0_45 = arith.constant 0 : index
    %179 = vector.load %arg5[%c0_44, %c0_45] : memref<1x128xf32, #tpu.memory_space<vmem>>, vector<1x128xf32>
    %180 = vector.broadcast %179 : vector<1x128xf32> to vector<8x128xf32>
    %181 = arith.addf %178, %180 : vector<8x128xf32>
    %cst_46 = arith.constant 0.000000e+00 : f32
    %182 = vector.broadcast %cst_46 : f32 to vector<8x128xf32>
    %183 = arith.maximumf %181, %182 : vector<8x128xf32>
    %c0_47 = arith.constant 0 : index
    %c0_48 = arith.constant 0 : index
    %184 = vector.load %arg6[%c0_47, %c0_48] : memref<128x128xf32, #tpu.memory_space<vmem>>, vector<128x128xf32>
    %cst_49 = arith.constant dense<0.000000e+00> : vector<8x128xf32>
    %185 = tpu.matmul %183, %184, %cst_49 {dimension_numbers = #tpu.dot_dimension_numbers<[1], [0], [0], [1], [0, 0, 1, 1], [], []>} : vector<8x128xf32>, vector<128x128xf32>, vector<8x128xf32> -> vector<8x128xf32>
    %c0_50 = arith.constant 0 : index
    %c0_51 = arith.constant 0 : index
    %186 = vector.load %arg7[%c0_50, %c0_51] : memref<1x128xf32, #tpu.memory_space<vmem>>, vector<1x128xf32>
    %187 = vector.broadcast %186 : vector<1x128xf32> to vector<8x128xf32>
    %188 = arith.addf %185, %187 : vector<8x128xf32>
    %cst_52 = arith.constant 0.000000e+00 : f32
    %189 = vector.broadcast %cst_52 : f32 to vector<8x128xf32>
    %190 = arith.maximumf %188, %189 : vector<8x128xf32>
    %c0_53 = arith.constant 0 : index
    %c0_54 = arith.constant 0 : index
    %191 = vector.load %arg8[%c0_53, %c0_54] : memref<8x128xf32, #tpu.memory_space<vmem>>, vector<8x128xf32>
    tpu.vector_store %arg8[%c0_53, %c0_54], %190 {strides = array<i32>} : memref<8x128xf32, #tpu.memory_space<vmem>>, vector<8x128xf32>,
    return
  }
}

</mosaic_0001>

<bundles_post_ra>
// kernel: new_seq_classifier_forward.1
= control target key start
LH: loop header
LB: loop body
LE: loop exit
PB: predicated region body
PF: predicated region fallthrough
CT: control target
= control target key end

     0   :  { %13 = vsyncpa [#allocation3], 0  ;;  %s3417_s0 = inlined_call_operand.vmem [shape: f32[64,128], index: 0, kind: input, shape index: {}]   ;;  %s3418_s1 = inlined_call_operand.hbm [shape: f32[128,512], index: 1, kind: input, shape index: {}]   ;;  %s3419_s2 = inlined_call_operand.hbm [shape: f32[128,512], index: 2, kind: input, shape index: {}]   ;;  %s3420_s3 = inlined_call_operand.vmem [shape: f32[1,512], index: 3, kind: input, shape index: {}]   ;;  %s3421_s4 = inlined_call_operand.vmem [shape: f32[128,128], index: 4, kind: input, shape index: {}]   ;;  %s3422_s5 = inlined_call_operand.vmem [shape: f32[1,128], index: 5, kind: input, shape index: {}]   ;;  %s3423_s6 = inlined_call_operand.vmem [shape: f32[128,128], index: 6, kind: input, shape index: {}]   ;;  %s3424_s7 = inlined_call_operand.vmem [shape: f32[1,128], index: 7, kind: input, shape index: {}]   ;;  %s3425_s8 = inlined_call_operand.vmem [shape: f32[8,128], index: 8, kind: output, shape index: {}]  }
   0x1   :  { %14 = vsyncpa [#allocation5], 0  ;;  %s2248_s27 = smov [#allocation2]  }
   0x2   :  { %s22_s28 = sshll.u32 %s2248_s27, 4  ;;  %s23_s28 = int_to_ptr.vmem [resolvable:$true] %s22_s28 }
   0x3   :  { %s2212_s29 = scalar_lea.vmem %s23_s28, 8192  ;;  %p2217_p1 = scmp.lt.s32.totalorder %s23_s28, %s23_s28 }
   0x4   :  { %p2213_p0 = scmp.ne.s32.totalorder %s23_s28, %s2212_s29  ;;  %p2218_p2 = scmp.lt.s32.totalorder %s2212_s29, %s2212_s29 }
   0x6   :  { %p2219_p3 = por %p2218_p2, %p2217_p1 }
   0x8   :  { %p2220_p4 = pnand %p2219_p3, %p2213_p0 }
   0xa   :  { %2223 = shalt.err (!%p2220_p4)
}
   0xb   :  { %s2249_s30 = smov 512   ;;  %s2250_s9 = smov 32  }
   0xc   :  { %28 = dma.hbm_to_vmem [thread:$0]  %s3418_s1, 8192, %s23_s28, [#allocation3], %s2249_s30, %s2249_s30, %s2250_s9  }
   0xd   :  { %s2251_s12 = smov [#allocation4]  }
   0xe   :  { %s34_s13 = sshll.u32 %s2251_s12, 4  ;;  %s35_s13 = int_to_ptr.vmem [resolvable:$true] %s34_s13 }
   0xf   :  { %s2232_s14 = scalar_lea.vmem %s35_s13, 8192  ;;  %p2237_p6 = scmp.lt.s32.totalorder %s35_s13, %s35_s13 }
  0x10   :  { %p2233_p5 = scmp.ne.s32.totalorder %s35_s13, %s2232_s14  ;;  %p2238_p7 = scmp.lt.s32.totalorder %s2232_s14, %s2232_s14 }
  0x12   :  { %p2239_p8 = por %p2238_p7, %p2237_p6 }
  0x14   :  { %p2240_p9 = pnand %p2239_p8, %p2233_p5 }
  0x16   :  { %2243 = shalt.err (!%p2240_p9)
}
  0x17   :  { %40 = dma.hbm_to_vmem [thread:$0]  %s3419_s2, 8192, %s35_s13, [#allocation5], %s2249_s30, %s2249_s30, %s2250_s9  }
  0x18   :  { %2244 = dma.done.wait [#allocation3], 8192  }
  0x19   :  { %2245 = vsyncadd [#allocation3], 4294959104 }
  0x1a   :  { %2246 = dma.done.wait [#allocation5], 8192  }
  0x1b   :  { %2247 = vsyncadd [#allocation5], 4294959104  ;;  %v3426_v0 = vmov 0.0   ;;  %v126_v1 = vld [vmem:[#allocation2 + $0x1e8] sm:$0xff]  ;;  %v128_v2 = vld [vmem:[#allocation2 + $0x1f8] sm:$0xff]  ;;  %vm2253_vm0 = vmmov 0  }
  0x1c   :  { %215 = vmatprep.mubr.f32.mxu0 %v3426_v0  ;;  %328 = vmatprep.mubr.f32.mxu1 %v3426_v0  ;;  %v125_v3 = vld [vmem:[#allocation2 + $0x1e0] sm:$0xff]  ;;  %v127_v4 = vld [vmem:[#allocation2 + $0x1f0] sm:$0xff]  ;;  %v122_v5 = vld [vmem:[#allocation2 + $0x1c8] sm:$0xff] }
  0x1d   :  { %151 = vmatprep.subr.mxu0 %v126_v1  ;;  %264 = vmatprep.subr.mxu1 %v128_v2  ;;  %v124_v6 = vld [vmem:[#allocation2 + $0x1d8] sm:$0xff]  ;;  %v121_v7 = vld [vmem:[#allocation2 + $0x1c0] sm:$0xff]  ;;  %v123_v8 = vld [vmem:[#allocation2 + $0x1d0] sm:$0xff] }
  0x1e   :  { %152 = vmatpush1.msra.mxu0 %v125_v3  ;;  %265 = vmatpush1.msra.mxu1 %v127_v4  ;;  %v118_v9 = vld [vmem:[#allocation2 + $0x1a8] sm:$0xff]  ;;  %v120_v10 = vld [vmem:[#allocation2 + $0x1b8] sm:$0xff]  ;;  %v117_v11 = vld [vmem:[#allocation2 + $0x1a0] sm:$0xff] }
  0x1f   :  { %153 = vmatprep.subr.mxu0 %v122_v5  ;;  %266 = vmatprep.subr.mxu1 %v124_v6  ;;  %v119_v12 = vld [vmem:[#allocation2 + $0x1b0] sm:$0xff]  ;;  %v114_v13 = vld [vmem:[#allocation2 + $0x188] sm:$0xff]  ;;  %v116_v14 = vld [vmem:[#allocation2 + $0x198] sm:$0xff] }
  0x20   :  { %154 = vmatpush1.msra.mxu0 %v121_v7  ;;  %267 = vmatpush1.msra.mxu1 %v123_v8  ;;  %v113_v15 = vld [vmem:[#allocation2 + $0x180] sm:$0xff]  ;;  %v115_v16 = vld [vmem:[#allocation2 + $0x190] sm:$0xff]  ;;  %v110_v17 = vld [vmem:[#allocation2 + $0x168] sm:$0xff] }
  0x21   :  { %155 = vmatprep.subr.mxu0 %v118_v9  ;;  %268 = vmatprep.subr.mxu1 %v120_v10  ;;  %v112_v18 = vld [vmem:[#allocation2 + $0x178] sm:$0xff]  ;;  %v109_v19 = vld [vmem:[#allocation2 + $0x160] sm:$0xff]  ;;  %v111_v20 = vld [vmem:[#allocation2 + $0x170] sm:$0xff] }
  0x22   :  { %156 = vmatpush1.msra.mxu0 %v117_v11  ;;  %269 = vmatpush1.msra.mxu1 %v119_v12  ;;  %v106_v21 = vld [vmem:[#allocation2 + $0x148] sm:$0xff]  ;;  %v108_v22 = vld [vmem:[#allocation2 + $0x158] sm:$0xff]  ;;  %v105_v23 = vld [vmem:[#allocation2 + $0x140] sm:$0xff] }
  0x23   :  { %157 = vmatprep.subr.mxu0 %v114_v13  ;;  %270 = vmatprep.subr.mxu1 %v116_v14  ;;  %v107_v24 = vld [vmem:[#allocation2 + $0x150] sm:$0xff]  ;;  %v102_v25 = vld [vmem:[#allocation2 + $0x128] sm:$0xff]  ;;  %v104_v26 = vld [vmem:[#allocation2 + $0x138] sm:$0xff] }
  0x24   :  { %158 = vmatpush1.msra.mxu0 %v113_v15  ;;  %271 = vmatpush1.msra.mxu1 %v115_v16  ;;  %v101_v27 = vld [vmem:[#allocation2 + $0x120] sm:$0xff]  ;;  %v103_v28 = vld [vmem:[#allocation2 + $0x130] sm:$0xff]  ;;  %v98_v29 = vld [vmem:[#allocation2 + $0x108] sm:$0xff] }
  0x25   :  { %159 = vmatprep.subr.mxu0 %v110_v17  ;;  %272 = vmatprep.subr.mxu1 %v112_v18  ;;  %v100_v30 = vld [vmem:[#allocation2 + $0x118] sm:$0xff]  ;;  %v97_v31 = vld [vmem:[#allocation2 + $0x100] sm:$0xff]  ;;  %v99_v32 = vld [vmem:[#allocation2 + $0x110] sm:$0xff] }
  0x26   :  { %160 = vmatpush1.msra.mxu0 %v109_v19  ;;  %273 = vmatpush1.msra.mxu1 %v111_v20  ;;  %v94_v33 = vld [vmem:[#allocation2 + $0xe8] sm:$0xff]  ;;  %v96_v34 = vld [vmem:[#allocation2 + $0xf8] sm:$0xff]  ;;  %v93_v35 = vld [vmem:[#allocation2 + $0xe0] sm:$0xff] }
  0x27   :  { %161 = vmatprep.subr.mxu0 %v106_v21  ;;  %274 = vmatprep.subr.mxu1 %v108_v22  ;;  %v95_v36 = vld [vmem:[#allocation2 + $0xf0] sm:$0xff]  ;;  %v90_v37 = vld [vmem:[#allocation2 + $0xc8] sm:$0xff]  ;;  %v92_v38 = vld [vmem:[#allocation2 + $0xd8] sm:$0xff] }
  0x28   :  { %162 = vmatpush1.msra.mxu0 %v105_v23  ;;  %275 = vmatpush1.msra.mxu1 %v107_v24  ;;  %v89_v39 = vld [vmem:[#allocation2 + $0xc0] sm:$0xff]  ;;  %v91_v40 = vld [vmem:[#allocation2 + $0xd0] sm:$0xff]  ;;  %v86_v41 = vld [vmem:[#allocation2 + $0xa8] sm:$0xff] }
  0x29   :  { %163 = vmatprep.subr.mxu0 %v102_v25  ;;  %276 = vmatprep.subr.mxu1 %v104_v26  ;;  %v88_v42 = vld [vmem:[#allocation2 + $0xb8] sm:$0xff]  ;;  %v85_v43 = vld [vmem:[#allocation2 + $0xa0] sm:$0xff]  ;;  %v87_v44 = vld [vmem:[#allocation2 + $0xb0] sm:$0xff] }
  0x2a   :  { %164 = vmatpush1.msra.mxu0 %v101_v27  ;;  %277 = vmatpush1.msra.mxu1 %v103_v28  ;;  %v82_v45 = vld [vmem:[#allocation2 + $0x88] sm:$0xff]  ;;  %v84_v46 = vld [vmem:[#allocation2 + $0x98] sm:$0xff]  ;;  %v81_v47 = vld [vmem:[#allocation2 + $0x80] sm:$0xff] }
  0x2b   :  { %165 = vmatprep.subr.mxu0 %v98_v29  ;;  %278 = vmatprep.subr.mxu1 %v100_v30  ;;  %v83_v48 = vld [vmem:[#allocation2 + $0x90] sm:$0xff]  ;;  %v78_v49 = vld [vmem:[#allocation2 + $0x68] sm:$0xff]  ;;  %v80_v50 = vld [vmem:[#allocation2 + $0x78] sm:$0xff] }
  0x2c   :  { %166 = vmatpush1.msra.mxu0 %v97_v31  ;;  %279 = vmatpush1.msra.mxu1 %v99_v32  ;;  %v77_v51 = vld [vmem:[#allocation2 + $0x60] sm:$0xff]  ;;  %v79_v52 = vld [vmem:[#allocation2 + $0x70] sm:$0xff]  ;;  %v74_v53 = vld [vmem:[#allocation2 + $0x48] sm:$0xff] }
  0x2d   :  { %167 = vmatprep.subr.mxu0 %v94_v33  ;;  %280 = vmatprep.subr.mxu1 %v96_v34  ;;  %v76_v54 = vld [vmem:[#allocation2 + $0x58] sm:$0xff]  ;;  %v73_v55 = vld [vmem:[#allocation2 + $0x40] sm:$0xff]  ;;  %v75_v56 = vld [vmem:[#allocation2 + $0x50] sm:$0xff] }
  0x2e   :  { %168 = vmatpush1.msra.mxu0 %v93_v35  ;;  %281 = vmatpush1.msra.mxu1 %v95_v36  ;;  %v70_v57 = vld [vmem:[#allocation2 + $0x28] sm:$0xff]  ;;  %v72_v58 = vld [vmem:[#allocation2 + $0x38] sm:$0xff]  ;;  %v69_v59 = vld [vmem:[#allocation2 + $0x20] sm:$0xff] }
  0x2f   :  { %169 = vmatprep.subr.mxu0 %v90_v37  ;;  %282 = vmatprep.subr.mxu1 %v92_v38  ;;  %v71_v60 = vld [vmem:[#allocation2 + $0x30] sm:$0xff]  ;;  %v66_v61 = vld [vmem:[#allocation2 + $0x8] sm:$0xff]  ;;  %v68_v62 = vld [vmem:[#allocation2 + $0x18] sm:$0xff] }
  0x30   :  { %170 = vmatpush1.msra.mxu0 %v89_v39  ;;  %283 = vmatpush1.msra.mxu1 %v91_v40  ;;  %v65_v63 = vld [vmem:[#allocation2] sm:$0xff]  ;;  %v67_v1 = vld [vmem:[#allocation2 + $0x10] sm:$0xff]  ;;  %v2310_v3 = vld [vmem:[#allocation4 + $0x1e8] sm:$0xff] }
  0x31   :  { %171 = vmatprep.subr.mxu0 %v86_v41  ;;  %284 = vmatprep.subr.mxu1 %v88_v42  ;;  %v57_v2 = vld [vmem:[%s3417_s0] sm:$0xff]  ;;  %3518 = vst [vmem:[#allocation8_spill] sm:$0xff] %v2310_v3  ;;  %v2312_v4 = vld [vmem:[#allocation4 + $0x1f8] sm:$0xff]  ;;  %v2316_v6 = vld [vmem:[#allocation4 + $0x1f0] sm:$0xff] }
  0x32   :  { %172 = vmatpush1.msra.mxu0 %v85_v43  ;;  %285 = vmatpush1.msra.mxu1 %v87_v44  ;;  %3519 = vst [vmem:[#allocation9_spill] sm:$0xff] %v2312_v4  ;;  %v2314_v5 = vld [vmem:[#allocation4 + $0x1e0] sm:$0xff]  ;;  %v2318_v7 = vld [vmem:[#allocation4 + $0x1c8] sm:$0xff]  ;;  %v2320_v8 = vld [vmem:[#allocation4 + $0x1d8] sm:$0xff] }
  0x33   :  { %173 = vmatprep.subr.mxu0 %v82_v45  ;;  %286 = vmatprep.subr.mxu1 %v84_v46  ;;  %v2326_v9 = vld [vmem:[#allocation4 + $0x1c0] sm:$0xff]  ;;  %v2328_v10 = vld [vmem:[#allocation4 + $0x1d0] sm:$0xff]  ;;  %v58_v11 = vld [vmem:[%s3417_s0 + $0x8] sm:$0xff] }
  0x34   :  { %174 = vmatpush1.msra.mxu0 %v81_v47  ;;  %287 = vmatpush1.msra.mxu1 %v83_v48  ;;  %v2337_v12 = vld [vmem:[#allocation4 + $0x1a8] sm:$0xff]  ;;  %v2339_v13 = vld [vmem:[#allocation4 + $0x1b8] sm:$0xff]  ;;  %v2343_v14 = vld [vmem:[#allocation4 + $0x1a0] sm:$0xff] }
  0x35   :  { %175 = vmatprep.subr.mxu0 %v78_v49  ;;  %288 = vmatprep.subr.mxu1 %v80_v50  ;;  %v2345_v15 = vld [vmem:[#allocation4 + $0x1b0] sm:$0xff]  ;;  %v2347_v16 = vld [vmem:[#allocation4 + $0x188] sm:$0xff]  ;;  %v2349_v17 = vld [vmem:[#allocation4 + $0x198] sm:$0xff] }
  0x36   :  { %176 = vmatpush1.msra.mxu0 %v77_v51  ;;  %289 = vmatpush1.msra.mxu1 %v79_v52  ;;  %v2355_v18 = vld [vmem:[#allocation4 + $0x180] sm:$0xff]  ;;  %v2357_v19 = vld [vmem:[#allocation4 + $0x190] sm:$0xff]  ;;  %v2366_v21 = vld [vmem:[#allocation4 + $0x168] sm:$0xff] }
  0x37   :  { %177 = vmatprep.subr.mxu0 %v74_v53  ;;  %290 = vmatprep.subr.mxu1 %v76_v54  ;;  %v59_v20 = vld [vmem:[%s3417_s0 + $0x10] sm:$0xff]  ;;  %v2368_v22 = vld [vmem:[#allocation4 + $0x178] sm:$0xff]  ;;  %v2372_v23 = vld [vmem:[#allocation4 + $0x160] sm:$0xff] }
  0x38   :  { %178 = vmatpush1.msra.mxu0 %v73_v55  ;;  %291 = vmatpush1.msra.mxu1 %v75_v56  ;;  %v2374_v24 = vld [vmem:[#allocation4 + $0x170] sm:$0xff]  ;;  %v2376_v25 = vld [vmem:[#allocation4 + $0x148] sm:$0xff]  ;;  %v2378_v26 = vld [vmem:[#allocation4 + $0x158] sm:$0xff] }
  0x39   :  { %179 = vmatprep.subr.mxu0 %v70_v57  ;;  %292 = vmatprep.subr.mxu1 %v72_v58  ;;  %v2384_v27 = vld [vmem:[#allocation4 + $0x140] sm:$0xff]  ;;  %v2386_v28 = vld [vmem:[#allocation4 + $0x150] sm:$0xff]  ;;  %v60_v29 = vld [vmem:[%s3417_s0 + $0x18] sm:$0xff] }
  0x3a   :  { %180 = vmatpush1.msra.mxu0 %v69_v59  ;;  %293 = vmatpush1.msra.mxu1 %v71_v60  ;;  %v2395_v30 = vld [vmem:[#allocation4 + $0x128] sm:$0xff]  ;;  %v2397_v31 = vld [vmem:[#allocation4 + $0x138] sm:$0xff]  ;;  %v2401_v32 = vld [vmem:[#allocation4 + $0x120] sm:$0xff] }
  0x3b   :  { %181 = vmatprep.subr.mxu0 %v66_v61  ;;  %294 = vmatprep.subr.mxu1 %v68_v62  ;;  %v2403_v33 = vld [vmem:[#allocation4 + $0x130] sm:$0xff]  ;;  %v2405_v34 = vld [vmem:[#allocation4 + $0x108] sm:$0xff]  ;;  %v2407_v35 = vld [vmem:[#allocation4 + $0x118] sm:$0xff] }
  0x3c   :  { %182 = vmatpush1.msra.mxu0 %v65_v63  ;;  %295 = vmatpush1.msra.mxu1 %v67_v1  ;;  %v2413_v36 = vld [vmem:[#allocation4 + $0x100] sm:$0xff]  ;;  %v2415_v37 = vld [vmem:[#allocation4 + $0x110] sm:$0xff]  ;;  %v2424_v39 = vld [vmem:[#allocation4 + $0xe8] sm:$0xff] }
  0x3d   :  { %216 = vmatmul.mubr.f32.vlgmr.msra.gmra.mxu0 %v57_v2  ;;  %329 = vmatmul.mubr.f32.vlgmr.msra.gmra.mxu1 %v57_v2  ;;  %v61_v38 = vld [vmem:[%s3417_s0 + $0x20] sm:$0xff]  ;;  %v2426_v40 = vld [vmem:[#allocation4 + $0xf8] sm:$0xff]  ;;  %v2432_v42 = vld [vmem:[#allocation4 + $0xf0] sm:$0xff] }
  0x3e   :  { %441 = vmatprep.subr.mxu0 %v2310_v3  ;;  %512 = vmatprep.subr.mxu1 %v2312_v4  ;;  %v2430_v41 = vld [vmem:[#allocation4 + $0xe0] sm:$0xff]  ;;  %v2434_v43 = vld [vmem:[#allocation4 + $0xc8] sm:$0xff]  ;;  %v2436_v44 = vld [vmem:[#allocation4 + $0xd8] sm:$0xff] }
  0x3f   :  { %442 = vmatpush1.msra.mxu0 %v2314_v5  ;;  %513 = vmatpush1.msra.mxu1 %v2316_v6  ;;  %v2442_v45 = vld [vmem:[#allocation4 + $0xc0] sm:$0xff]  ;;  %v2444_v46 = vld [vmem:[#allocation4 + $0xd0] sm:$0xff]  ;;  %v62_v47 = vld [vmem:[%s3417_s0 + $0x28] sm:$0xff] }
  0x40   :  { %443 = vmatprep.subr.mxu0 %v2318_v7  ;;  %514 = vmatprep.subr.mxu1 %v2320_v8  ;;  %v2453_v48 = vld [vmem:[#allocation4 + $0xa8] sm:$0xff]  ;;  %v2455_v49 = vld [vmem:[#allocation4 + $0xb8] sm:$0xff]  ;;  %v2459_v50 = vld [vmem:[#allocation4 + $0xa0] sm:$0xff] }
  0x41   :  { %221 = vmatprep.mubr.f32.mxu0 %v3426_v0  ;;  %334 = vmatprep.mubr.f32.mxu1 %v3426_v0  ;;  %v2461_v51 = vld [vmem:[#allocation4 + $0xb0] sm:$0xff]  ;;  %v2463_v52 = vld [vmem:[#allocation4 + $0x88] sm:$0xff]  ;;  %v2465_v53 = vld [vmem:[#allocation4 + $0x98] sm:$0xff] }
  0x42   :  { %444 = vmatpush1.msra.mxu0 %v2326_v9  ;;  %515 = vmatpush1.msra.mxu1 %v2328_v10  ;;  %3520 = vst [vmem:[#allocation10_spill] sm:$0xff] %v2461_v51  ;;  %3521 = vst [vmem:[#allocation11_spill] sm:$0xff] %v2463_v52  ;;  %v2471_v54 = vld [vmem:[#allocation4 + $0x80] sm:$0xff]  ;;  %v2473_v55 = vld [vmem:[#allocation4 + $0x90] sm:$0xff] }
  0x43   :  { %222 = vmatmul.mubr.f32.gmra.mxu0 %v58_v11  ;;  %335 = vmatmul.mubr.f32.gmra.mxu1 %v58_v11  ;;  %3522 = vst [vmem:[#allocation12_spill] sm:$0xff] %v2465_v53  ;;  %3523 = vst [vmem:[#allocation13_spill] sm:$0xff] %v2471_v54  ;;  %v63_v56 = vld [vmem:[%s3417_s0 + $0x30] sm:$0xff]  ;;  %v2482_v57 = vld [vmem:[#allocation4 + $0x68] sm:$0xff] }
  0x44   :  { %445 = vmatprep.subr.mxu0 %v2337_v12  ;;  %516 = vmatprep.subr.mxu1 %v2339_v13  ;;  %3524 = vst [vmem:[#allocation14_spill] sm:$0xff] %v2473_v55  ;;  %3525 = vst [vmem:[#allocation15_spill] sm:$0xff] %v2482_v57  ;;  %v2484_v58 = vld [vmem:[#allocation4 + $0x78] sm:$0xff]  ;;  %v2488_v59 = vld [vmem:[#allocation4 + $0x60] sm:$0xff] }
  0x45   :  { %446 = vmatpush1.msra.mxu0 %v2343_v14  ;;  %517 = vmatpush1.msra.mxu1 %v2345_v15  ;;  %3526 = vst [vmem:[#allocation16_spill] sm:$0xff] %v2484_v58  ;;  %3527 = vst [vmem:[#allocation17_spill] sm:$0xff] %v2488_v59  ;;  %v2490_v60 = vld [vmem:[#allocation4 + $0x70] sm:$0xff]  ;;  %v2492_v61 = vld [vmem:[#allocation4 + $0x48] sm:$0xff] }
  0x46   :  { %447 = vmatprep.subr.mxu0 %v2347_v16  ;;  %518 = vmatprep.subr.mxu1 %v2349_v17  ;;  %3528 = vst [vmem:[#allocation18_spill] sm:$0xff] %v2490_v60  ;;  %3529 = vst [vmem:[#allocation19_spill] sm:$0xff] %v2492_v61  ;;  %v2494_v62 = vld [vmem:[#allocation4 + $0x58] sm:$0xff]  ;;  %v2500_v63 = vld [vmem:[#allocation4 + $0x40] sm:$0xff] }
  0x47   :  { %227 = vmatprep.mubr.f32.mxu0 %v3426_v0  ;;  %340 = vmatprep.mubr.f32.mxu1 %v3426_v0  ;;  %3530 = vst [vmem:[#allocation20_spill] sm:$0xff] %v2494_v62  ;;  %3531 = vst [vmem:[#allocation21_spill] sm:$0xff] %v2500_v63  ;;  %v2502_v1 = vld [vmem:[#allocation4 + $0x50] sm:$0xff]  ;;  %v64_v2 = vld [vmem:[%s3417_s0 + $0x38] sm:$0xff] }
  0x48   :  { %448 = vmatpush1.msra.mxu0 %v2355_v18  ;;  %519 = vmatpush1.msra.mxu1 %v2357_v19  ;;  %3532 = vst [vmem:[#allocation22_spill] sm:$0xff] %v2502_v1  ;;  %v2511_v11 = vld [vmem:[#allocation4 + $0x28] sm:$0xff] }
  0x49   :  { %228 = vmatmul.mubr.f32.gmra.mxu0 %v59_v20  ;;  %341 = vmatmul.mubr.f32.gmra.mxu1 %v59_v20  ;;  %3533 = vst [vmem:[#allocation23_spill] sm:$0xff] %v2511_v11  ;;  %v2513_v20 = vld [vmem:[#allocation4 + $0x38] sm:$0xff] }
  0x4a   :  { %449 = vmatprep.subr.mxu0 %v2366_v21  ;;  %520 = vmatprep.subr.mxu1 %v2368_v22  ;;  %3534 = vst [vmem:[#allocation24_spill] sm:$0xff] %v2513_v20 }
  0x4b   :  { %450 = vmatpush1.msra.mxu0 %v2372_v23  ;;  %521 = vmatpush1.msra.mxu1 %v2374_v24 }
  0x4c   :  { %451 = vmatprep.subr.mxu0 %v2376_v25  ;;  %522 = vmatprep.subr.mxu1 %v2378_v26 }
  0x4d   :  { %233 = vmatprep.mubr.f32.mxu0 %v3426_v0  ;;  %346 = vmatprep.mubr.f32.mxu1 %v3426_v0 }
  0x4e   :  { %452 = vmatpush1.msra.mxu0 %v2384_v27  ;;  %523 = vmatpush1.msra.mxu1 %v2386_v28 }
  0x4f   :  { %234 = vmatmul.mubr.f32.gmra.mxu0 %v60_v29  ;;  %347 = vmatmul.mubr.f32.gmra.mxu1 %v60_v29  ;;  %v2517_v29 = vld [vmem:[#allocation4 + $0x20] sm:$0xff] }
  0x50   :  { %453 = vmatprep.subr.mxu0 %v2395_v30  ;;  %524 = vmatprep.subr.mxu1 %v2397_v31  ;;  %3535 = vst [vmem:[#allocation25_spill] sm:$0xff] %v2517_v29 }
  0x51   :  { %454 = vmatpush1.msra.mxu0 %v2401_v32  ;;  %525 = vmatpush1.msra.mxu1 %v2403_v33 }
  0x52   :  { %455 = vmatprep.subr.mxu0 %v2405_v34  ;;  %526 = vmatprep.subr.mxu1 %v2407_v35 }
  0x53   :  { %239 = vmatprep.mubr.f32.mxu0 %v3426_v0  ;;  %352 = vmatprep.mubr.f32.mxu1 %v3426_v0 }
  0x54   :  { %456 = vmatpush1.msra.mxu0 %v2413_v36  ;;  %527 = vmatpush1.msra.mxu1 %v2415_v37 }
  0x55   :  { %240 = vmatmul.mubr.f32.gmra.mxu0 %v61_v38  ;;  %353 = vmatmul.mubr.f32.gmra.mxu1 %v61_v38  ;;  %v2519_v38 = vld [vmem:[#allocation4 + $0x30] sm:$0xff] }
  0x56   :  { %457 = vmatprep.subr.mxu0 %v2424_v39  ;;  %528 = vmatprep.subr.mxu1 %v2426_v40  ;;  %3536 = vst [vmem:[#allocation26_spill] sm:$0xff] %v2519_v38 }
  0x57   :  { %458 = vmatpush1.msra.mxu0 %v2430_v41  ;;  %529 = vmatpush1.msra.mxu1 %v2432_v42 }
  0x58   :  { %459 = vmatprep.subr.mxu0 %v2434_v43  ;;  %530 = vmatprep.subr.mxu1 %v2436_v44 }
  0x59   :  { %245 = vmatprep.mubr.f32.mxu0 %v3426_v0  ;;  %358 = vmatprep.mubr.f32.mxu1 %v3426_v0 }
  0x5a   :  { %460 = vmatpush1.msra.mxu0 %v2442_v45  ;;  %531 = vmatpush1.msra.mxu1 %v2444_v46 }
  0x5b   :  { %246 = vmatmul.mubr.f32.gmra.mxu0 %v62_v47  ;;  %359 = vmatmul.mubr.f32.gmra.mxu1 %v62_v47  ;;  %v2521_v47 = vld [vmem:[#allocation4 + $0x8] sm:$0xff] }
  0x5c   :  { %461 = vmatprep.subr.mxu0 %v2453_v48  ;;  %532 = vmatprep.subr.mxu1 %v2455_v49  ;;  %3537 = vst [vmem:[#allocation27_spill] sm:$0xff] %v2521_v47 }
  0x5d   :  { %462 = vmatpush1.msra.mxu0 %v2459_v50  ;;  %533 = vmatpush1.msra.mxu1 %v2461_v51 }
  0x5e   :  { %463 = vmatprep.subr.mxu0 %v2463_v52  ;;  %534 = vmatprep.subr.mxu1 %v2465_v53 }
  0x5f   :  { %251 = vmatprep.mubr.f32.mxu0 %v3426_v0  ;;  %364 = vmatprep.mubr.f32.mxu1 %v3426_v0 }
  0x60   :  { %464 = vmatpush1.msra.mxu0 %v2471_v54  ;;  %535 = vmatpush1.msra.mxu1 %v2473_v55 }
  0x61   :  { %252 = vmatmul.mubr.f32.gmra.mxu0 %v63_v56  ;;  %365 = vmatmul.mubr.f32.gmra.mxu1 %v63_v56  ;;  %v2523_v56 = vld [vmem:[#allocation4 + $0x18] sm:$0xff] }
  0x62   :  { %465 = vmatprep.subr.mxu0 %v2482_v57  ;;  %536 = vmatprep.subr.mxu1 %v2484_v58  ;;  %3538 = vst [vmem:[#allocation28_spill] sm:$0xff] %v2523_v56 }
  0x63   :  { %466 = vmatpush1.msra.mxu0 %v2488_v59  ;;  %537 = vmatpush1.msra.mxu1 %v2490_v60 }
  0x64   :  { %467 = vmatprep.subr.mxu0 %v2492_v61  ;;  %538 = vmatprep.subr.mxu1 %v2494_v62 }
  0x65   :  { %257 = vmatprep.mubr.f32.mxu0 %v3426_v0  ;;  %370 = vmatprep.mubr.f32.mxu1 %v3426_v0  ;;  %v2527_v0 = vld [vmem:[#allocation4] sm:$0xff] }
  0x66   :  { %468 = vmatpush1.msra.mxu0 %v2500_v63  ;;  %539 = vmatpush1.msra.mxu1 %v2502_v1  ;;  %3539 = vst [vmem:[#allocation29_spill] sm:$0xff] %v2527_v0  ;;  %v2531_v1 = vld [vmem:[#allocation4 + $0x10] sm:$0xff] }
  0x67   :  { %258 = vmatmul.mubr.f32.gmra.mxu0 %v64_v2  ;;  %371 = vmatmul.mubr.f32.gmra.mxu1 %v64_v2  ;;  %3540 = vst [vmem:[#allocation30_spill] sm:$0xff] %v2531_v1  ;;  %v3541_v2 = vmov 0.0  }
  0x68   :  { %469 = vmatprep.subr.mxu0 %v2511_v11  ;;  %540 = vmatprep.subr.mxu1 %v2513_v20 }
  0x69   :  { %470 = vmatpush1.msra.mxu0 %v2517_v29  ;;  %541 = vmatpush1.msra.mxu1 %v2519_v38 }
  0x6a   :  { %471 = vmatprep.subr.mxu0 %v2521_v47  ;;  %542 = vmatprep.subr.mxu1 %v2523_v56 }
  0x6b   :  { %472 = vmatpush1.msra.mxu0 %v2527_v0  ;;  %505 = vmatprep.mubr.f32.mxu0 %v3541_v2 }
  0x6c   :  { %543 = vmatpush1.msra.mxu1 %v2531_v1  ;;  %576 = vmatprep.mubr.f32.mxu1 %v3541_v2 }
  0x6d   :  { %506 = vmatmul.mubr.f32.vlgmr.msra.gmra.mxu0 %v3541_v2  ;;  %577 = vmatmul.mubr.f32.vlgmr.msra.gmra.mxu1 %v3541_v2 }
  0x6e   :  { %605 = vmatprep.subr.mxu0 %v2310_v3  ;;  %676 = vmatprep.subr.mxu1 %v2312_v4 }
  0x6f   :  { %606 = vmatpush1.msra.mxu0 %v2314_v5  ;;  %677 = vmatpush1.msra.mxu1 %v2316_v6 }
  0x70   :  { %607 = vmatprep.subr.mxu0 %v2318_v7  ;;  %678 = vmatprep.subr.mxu1 %v2320_v8 }
  0x71   :  { %608 = vmatpush1.msra.mxu0 %v2326_v9  ;;  %679 = vmatpush1.msra.mxu1 %v2328_v10 }
  0x72   :  { %609 = vmatprep.subr.mxu0 %v2337_v12  ;;  %680 = vmatprep.subr.mxu1 %v2339_v13 }
  0x73   :  { %610 = vmatpush1.msra.mxu0 %v2343_v14  ;;  %681 = vmatpush1.msra.mxu1 %v2345_v15 }
  0x74   :  { %611 = vmatprep.subr.mxu0 %v2347_v16  ;;  %682 = vmatprep.subr.mxu1 %v2349_v17 }
  0x75   :  { %612 = vmatpush1.msra.mxu0 %v2355_v18  ;;  %683 = vmatpush1.msra.mxu1 %v2357_v19 }
  0x76   :  { %613 = vmatprep.subr.mxu0 %v2366_v21  ;;  %684 = vmatprep.subr.mxu1 %v2368_v22 }
  0x77   :  { %614 = vmatpush1.msra.mxu0 %v2372_v23  ;;  %685 = vmatpush1.msra.mxu1 %v2374_v24 }
  0x78   :  { %615 = vmatprep.subr.mxu0 %v2376_v25  ;;  %686 = vmatprep.subr.mxu1 %v2378_v26 }
  0x79   :  { %616 = vmatpush1.msra.mxu0 %v2384_v27  ;;  %687 = vmatpush1.msra.mxu1 %v2386_v28 }
  0x7a   :  { %617 = vmatprep.subr.mxu0 %v2395_v30  ;;  %688 = vmatprep.subr.mxu1 %v2397_v31 }
  0x7b   :  { %618 = vmatpush1.msra.mxu0 %v2401_v32  ;;  %689 = vmatpush1.msra.mxu1 %v2403_v33 }
  0x7c   :  { %619 = vmatprep.subr.mxu0 %v2405_v34  ;;  %690 = vmatprep.subr.mxu1 %v2407_v35 }
  0x7d   :  { %620 = vmatpush1.msra.mxu0 %v2413_v36  ;;  %691 = vmatpush1.msra.mxu1 %v2415_v37 }
  0x7e   :  { %621 = vmatprep.subr.mxu0 %v2424_v39  ;;  %692 = vmatprep.subr.mxu1 %v2426_v40 }
  0x7f   :  { %622 = vmatpush1.msra.mxu0 %v2430_v41  ;;  %693 = vmatpush1.msra.mxu1 %v2432_v42 }
  0x80   :  { %623 = vmatprep.subr.mxu0 %v2434_v43  ;;  %694 = vmatprep.subr.mxu1 %v2436_v44 }
  0x81   :  { %624 = vmatpush1.msra.mxu0 %v2442_v45  ;;  %695 = vmatpush1.msra.mxu1 %v2444_v46 }
  0x82   :  { %625 = vmatprep.subr.mxu0 %v2453_v48  ;;  %696 = vmatprep.subr.mxu1 %v2455_v49 }
  0x83   :  { %626 = vmatpush1.msra.mxu0 %v2459_v50  ;;  %697 = vmatpush1.msra.mxu1 %v2461_v51 }
  0x84   :  { %627 = vmatprep.subr.mxu0 %v2463_v52  ;;  %698 = vmatprep.subr.mxu1 %v2465_v53  ;;  %v3542_v52 = vld [vmem:[#allocation22_spill] sm:$0xff] }
  0x85   :  { %628 = vmatpush1.msra.mxu0 %v2471_v54  ;;  %699 = vmatpush1.msra.mxu1 %v2473_v55 }
  0x86   :  { %629 = vmatprep.subr.mxu0 %v2482_v57  ;;  %700 = vmatprep.subr.mxu1 %v2484_v58 }
  0x87   :  { %630 = vmatpush1.msra.mxu0 %v2488_v59  ;;  %701 = vmatpush1.msra.mxu1 %v2490_v60 }
  0x88   :  { %631 = vmatprep.subr.mxu0 %v2492_v61  ;;  %702 = vmatprep.subr.mxu1 %v2494_v62 }
  0x89   :  { %632 = vmatpush1.msra.mxu0 %v2500_v63  ;;  %703 = vmatpush1.msra.mxu1 %v3542_v52 }
  0x8a   :  { %633 = vmatprep.subr.mxu0 %v2511_v11  ;;  %704 = vmatprep.subr.mxu1 %v2513_v20  ;;  %v131_v20 = vlaneseq }
  0x8b   :  { %634 = vmatpush1.msra.mxu0 %v2517_v29  ;;  %705 = vmatpush1.msra.mxu1 %v2519_v38 }
  0x8c   :  { %635 = vmatprep.subr.mxu0 %v2521_v47  ;;  %706 = vmatprep.subr.mxu1 %v2523_v56  ;;  %v132_v29 = vshrl.u32 %v131_v20, 7 }
  0x8d   :  { %636 = vmatpush1.msra.mxu0 %v2527_v0  ;;  %669 = vmatprep.mubr.f32.mxu0 %v3541_v2  ;;  %v129_v0 = vld [vmem:[%s3420_s3] sm:$0xf] }
  0x8e   :  { %707 = vmatpush1.msra.mxu1 %v2531_v1  ;;  %740 = vmatprep.mubr.f32.mxu1 %v3541_v2  ;;  %v133_v47 = vsub.s32 0, %v132_v29  ;;  %v141_v56 = vsub.s32 2, %v132_v29  ;;  %v137_v2 = vsub.s32 1, %v132_v29 }
  0x8f   :  { %769 = vmatprep.subr.mxu0 %v2310_v3  ;;  %840 = vmatprep.subr.mxu1 %v2312_v4  ;;  %v145_v3 = vsub.s32 3, %v132_v29 }
  0x90   :  { %v134_v63 = vrot.slane %v129_v0, %v133_v47  ;;  %v2620_v4 = vrot.slane %v129_v0, %v141_v56  ;;  %v138_v61 = vrot.slane %v129_v0, %v137_v2 }
  0x91   :  { %v2622_v60 = vrot.slane %v129_v0, %v145_v3 }
  0xfd   :  { %v2609_v11 = vpop.f32.mrf.mxu0  ;;  %v2611_v38 = vpop.f32.mrf.mxu1 }
  0xff   :  { %v2616_v52 = vpop.f32.mrf.mxu0  ;;  %v2618_v1 = vpop.f32.mrf.mxu1 }
 0x103   :  { %v223_v20 = vpop.f32.mrf.mxu0  ;;  %v336_v62 = vpop.f32.mrf.mxu1 }
 0x104   :  { %v2624_v59 = vadd.f32 %v223_v20, %v134_v63  ;;  %v2627_v58 = vadd.f32 %v336_v62, %v2620_v4 }
 0x105   :  { %v225_v57 = vpop.f32.mrf.mxu0  ;;  %v338_v55 = vpop.f32.mrf.mxu1 }
 0x106   :  { %3543 = vst [vmem:[#allocation31_spill] sm:$0xff] %v2624_v59  ;;  %3544 = vst [vmem:[#allocation32_spill] sm:$0xff] %v2627_v58  ;;  %v2629_v54 = vadd.f32 %v225_v57, %v138_v61  ;;  %v2632_v53 = vadd.f32 %v338_v55, %v2622_v60 }
 0x108   :  { %3545 = vst [vmem:[#allocation33_spill] sm:$0xff] %v2629_v54  ;;  %3546 = vst [vmem:[#allocation34_spill] sm:$0xff] %v2632_v53 }
 0x109   :  { %v229_v29 = vpop.f32.mrf.mxu0  ;;  %v342_v47 = vpop.f32.mrf.mxu1 }
 0x10a   :  { %v2634_v56 = vadd.f32 %v229_v29, %v134_v63  ;;  %v2637_v2 = vadd.f32 %v342_v47, %v2620_v4 }
 0x10b   :  { %v231_v0 = vpop.f32.mrf.mxu0  ;;  %v344_v3 = vpop.f32.mrf.mxu1 }
 0x10c   :  { %3547 = vst [vmem:[#allocation35_spill] sm:$0xff] %v2634_v56  ;;  %3548 = vst [vmem:[#allocation36_spill] sm:$0xff] %v2637_v2  ;;  %v2639_v20 = vadd.f32 %v231_v0, %v138_v61  ;;  %v2642_v62 = vadd.f32 %v344_v3, %v2622_v60 }
 0x10e   :  { %3549 = vst [vmem:[#allocation37_spill] sm:$0xff] %v2639_v20  ;;  %3550 = vst [vmem:[#allocation38_spill] sm:$0xff] %v2642_v62 }
 0x10f   :  { %v235_v58 = vpop.f32.mrf.mxu0  ;;  %v348_v57 = vpop.f32.mrf.mxu1 }
 0x110   :  { %v2644_v54 = vadd.f32 %v235_v58, %v134_v63  ;;  %v2647_v55 = vadd.f32 %v348_v57, %v2620_v4 }
 0x111   :  { %v237_v53 = vpop.f32.mrf.mxu0  ;;  %v350_v29 = vpop.f32.mrf.mxu1 }
 0x112   :  { %3551 = vst [vmem:[#allocation39_spill] sm:$0xff] %v2644_v54  ;;  %3552 = vst [vmem:[#allocation40_spill] sm:$0xff] %v2647_v55  ;;  %v2649_v56 = vadd.f32 %v237_v53, %v138_v61  ;;  %v2652_v47 = vadd.f32 %v350_v29, %v2622_v60 }
 0x114   :  { %3553 = vst [vmem:[#allocation41_spill] sm:$0xff] %v2649_v56  ;;  %3554 = vst [vmem:[#allocation42_spill] sm:$0xff] %v2652_v47 }
 0x115   :  { %v241_v2 = vpop.f32.mrf.mxu0  ;;  %v354_v0 = vpop.f32.mrf.mxu1 }
 0x116   :  { %v2654_v20 = vadd.f32 %v241_v2, %v134_v63  ;;  %v2657_v3 = vadd.f32 %v354_v0, %v2620_v4 }
 0x117   :  { %v243_v62 = vpop.f32.mrf.mxu0  ;;  %v356_v58 = vpop.f32.mrf.mxu1 }
 0x118   :  { %3555 = vst [vmem:[#allocation43_spill] sm:$0xff] %v2654_v20  ;;  %3556 = vst [vmem:[#allocation44_spill] sm:$0xff] %v2657_v3  ;;  %v2659_v54 = vadd.f32 %v243_v62, %v138_v61  ;;  %v2662_v57 = vadd.f32 %v356_v58, %v2622_v60 }
 0x11a   :  { %3557 = vst [vmem:[#allocation45_spill] sm:$0xff] %v2659_v54  ;;  %3558 = vst [vmem:[#allocation46_spill] sm:$0xff] %v2662_v57 }
 0x11b   :  { %v247_v55 = vpop.f32.mrf.mxu0  ;;  %v360_v53 = vpop.f32.mrf.mxu1 }
 0x11c   :  { %v2664_v56 = vadd.f32 %v247_v55, %v134_v63  ;;  %v2667_v29 = vadd.f32 %v360_v53, %v2620_v4 }
 0x11d   :  { %v249_v47 = vpop.f32.mrf.mxu0  ;;  %v362_v2 = vpop.f32.mrf.mxu1 }
 0x11e   :  { %3559 = vst [vmem:[#allocation47_spill] sm:$0xff] %v2664_v56  ;;  %3560 = vst [vmem:[#allocation48_spill] sm:$0xff] %v2667_v29  ;;  %v2669_v20 = vadd.f32 %v249_v47, %v138_v61  ;;  %v2672_v0 = vadd.f32 %v362_v2, %v2622_v60 }
 0x120   :  { %3561 = vst [vmem:[#allocation49_spill] sm:$0xff] %v2669_v20  ;;  %3562 = vst [vmem:[#allocation50_spill] sm:$0xff] %v2672_v0 }
 0x121   :  { %v253_v3 = vpop.f32.mrf.mxu0  ;;  %v366_v62 = vpop.f32.mrf.mxu1 }
 0x122   :  { %v2674_v54 = vadd.f32 %v253_v3, %v134_v63  ;;  %v2677_v58 = vadd.f32 %v366_v62, %v2620_v4 }
 0x123   :  { %v255_v57 = vpop.f32.mrf.mxu0  ;;  %v368_v55 = vpop.f32.mrf.mxu1 }
 0x124   :  { %3563 = vst [vmem:[#allocation51_spill] sm:$0xff] %v2674_v54  ;;  %3564 = vst [vmem:[#allocation52_spill] sm:$0xff] %v2677_v58  ;;  %v2679_v56 = vadd.f32 %v255_v57, %v138_v61  ;;  %v2682_v53 = vadd.f32 %v368_v55, %v2622_v60  ;;  %v218_v57 = vadd.f32 %v2609_v11, %v134_v63 }
 0x125   :  { %v220_v55 = vadd.f32 %v2616_v52, %v138_v61 }
 0x126   :  { %3565 = vst [vmem:[#allocation53_spill] sm:$0xff] %v2679_v56  ;;  %3566 = vst [vmem:[#allocation54_spill] sm:$0xff] %v2682_v53 }
 0x127   :  { %v259_v29 = vpop.f32.mrf.mxu0  ;;  %v372_v47 = vpop.f32.mrf.mxu1 }
 0x128   :  { %v2684_v20 = vadd.f32 %v259_v29, %v134_v63  ;;  %v2687_v2 = vadd.f32 %v372_v47, %v2620_v4  ;;  %v333_v47 = vadd.f32 %v2618_v1, %v2622_v60 }
 0x129   :  { %v261_v0 = vpop.f32.mrf.mxu0  ;;  %v374_v3 = vpop.f32.mrf.mxu1 }
 0x12a   :  { %3567 = vst [vmem:[#allocation55_spill] sm:$0xff] %v2684_v20  ;;  %3568 = vst [vmem:[#allocation56_spill] sm:$0xff] %v2687_v2  ;;  %v2689_v54 = vadd.f32 %v261_v0, %v138_v61  ;;  %v2692_v62 = vadd.f32 %v374_v3, %v2622_v60  ;;  %v331_v3 = vadd.f32 %v2611_v38, %v2620_v4 }
 0x12c   :  { %3569 = vst [vmem:[#allocation57_spill] sm:$0xff] %v2689_v54  ;;  %3570 = vst [vmem:[#allocation58_spill] sm:$0xff] %v2692_v62  ;;  %v3592_v54 = vld [vmem:[#allocation30_spill] sm:$0xff] }
 0x12d   :  { %v507_v58 = vpop.f32.mrf.mxu0  ;;  %v578_v56 = vpop.f32.mrf.mxu1 }
 0x12e   :  { %v583_v53 = vadd.f32 %v507_v58, %v218_v57  ;;  %v585_v63 = vadd.f32 %v578_v56, %v331_v3  ;;  %v3576_v3 = vld [vmem:[#allocation15_spill] sm:$0xff] }
 0x12f   :  { %v509_v59 = vpop.f32.mrf.mxu0  ;;  %v580_v51 = vpop.f32.mrf.mxu1 }
 0x130   :  { %v587_v29 = vmul.f32 0.5, %v583_v53  ;;  %v584_v20 = vadd.f32 %v509_v59, %v220_v55  ;;  %v586_v2 = vadd.f32 %v580_v51, %v333_v47  ;;  %v589_v11 = vmul.f32 0.5, %v585_v63  ;;  %v3574_v47 = vld [vmem:[#allocation13_spill] sm:$0xff]  ;;  %v3577_v63 = vld [vmem:[#allocation16_spill] sm:$0xff] }
 0x132   :  { %2060 = vtanh.f32 %v587_v29  ;;  %v588_v0 = vmul.f32 0.5, %v584_v20  ;;  %v3573_v29 = vld [vmem:[#allocation12_spill] sm:$0xff] }
 0x134   :  { %2062 = vtanh.f32 %v588_v0  ;;  %v3575_v0 = vld [vmem:[#allocation14_spill] sm:$0xff] }
 0x135   :  { %2064 = vtanh.f32 %v586_v2  ;;  %v3571_v2 = vld [vmem:[#allocation10_spill] sm:$0xff] }
 0x136   :  { %2066 = vtanh.f32 %v589_v11  ;;  %v3578_v11 = vld [vmem:[#allocation17_spill] sm:$0xff] }
 0x13f   :  { %v2061_v62 = vpop.eup %2060 }
 0x140   :  { %v593_v52 = vmul.f32 0.5, %v2061_v62  ;;  %v3572_v62 = vld [vmem:[#allocation11_spill] sm:$0xff] }
 0x141   :  { %v2063_v61 = vpop.eup %2062 }
 0x142   :  { %v596_v58 = vadd.f32 0.5, %v593_v52  ;;  %v594_v59 = vmul.f32 0.5, %v2063_v61  ;;  %v2065_v57 = vpop.eup %2064  ;;  %v3579_v52 = vld [vmem:[#allocation18_spill] sm:$0xff]  ;;  %v3580_v61 = vld [vmem:[#allocation19_spill] sm:$0xff] }
 0x143   :  { %v2067_v51 = vpop.eup %2066 }
 0x144   :  { %v597_v53 = vadd.f32 0.5, %v594_v59  ;;  %v601_v60 = vmul.f32 %v2065_v57, %v596_v58  ;;  %v595_v20 = vmul.f32 0.5, %v2067_v51  ;;  %v3581_v58 = vld [vmem:[#allocation20_spill] sm:$0xff]  ;;  %v3582_v59 = vld [vmem:[#allocation21_spill] sm:$0xff]  ;;  %v3584_v57 = vld [vmem:[#allocation23_spill] sm:$0xff] }
 0x145   :  { %v3587_v51 = vld [vmem:[#allocation26_spill] sm:$0xff] }
 0x146   :  { %v600_v55 = vmul.f32 0.0, %v597_v53  ;;  %v598_v4 = vadd.f32 0.5, %v595_v20  ;;  %v3583_v53 = vld [vmem:[#allocation22_spill] sm:$0xff]  ;;  %v3588_v20 = vld [vmem:[#allocation27_spill] sm:$0xff] }
 0x148   :  { %v2700_v1 = vadd.f32 %v601_v60, %v600_v55  ;;  %v3585_v55 = vld [vmem:[#allocation24_spill] sm:$0xff]  ;;  %v3586_v60 = vld [vmem:[#allocation25_spill] sm:$0xff] }
 0x14a   :  { %2068 = vtanh.f32 %v2700_v1 }
 0x157   :  { %v2069_v38 = vpop.eup %2068 }
 0x158   :  { %v604_v56 = vmul.f32 %v2069_v38, %v598_v4  ;;  %v3589_v4 = vld [vmem:[#allocation28_spill] sm:$0xff]  ;;  %v3590_v38 = vld [vmem:[#allocation29_spill] sm:$0xff] }
 0x15a   :  { %670 = vmatmul.mubr.f32.vlgmr.msra.gmra.mxu0 %v604_v56  ;;  %741 = vmatmul.mubr.f32.vlgmr.msra.gmra.mxu1 %v604_v56  ;;  %v3591_v56 = vmov 0.0  }
 0x15b   :  { %770 = vmatpush1.msra.mxu0 %v2314_v5  ;;  %841 = vmatpush1.msra.mxu1 %v2316_v6 }
 0x15c   :  { %771 = vmatprep.subr.mxu0 %v2318_v7  ;;  %842 = vmatprep.subr.mxu1 %v2320_v8 }
 0x15d   :  { %772 = vmatpush1.msra.mxu0 %v2326_v9  ;;  %843 = vmatpush1.msra.mxu1 %v2328_v10 }
 0x15e   :  { %773 = vmatprep.subr.mxu0 %v2337_v12  ;;  %844 = vmatprep.subr.mxu1 %v2339_v13 }
 0x15f   :  { %774 = vmatpush1.msra.mxu0 %v2343_v14  ;;  %845 = vmatpush1.msra.mxu1 %v2345_v15 }
 0x160   :  { %775 = vmatprep.subr.mxu0 %v2347_v16  ;;  %846 = vmatprep.subr.mxu1 %v2349_v17 }
 0x161   :  { %776 = vmatpush1.msra.mxu0 %v2355_v18  ;;  %847 = vmatpush1.msra.mxu1 %v2357_v19 }
 0x162   :  { %777 = vmatprep.subr.mxu0 %v2366_v21  ;;  %848 = vmatprep.subr.mxu1 %v2368_v22 }
 0x163   :  { %778 = vmatpush1.msra.mxu0 %v2372_v23  ;;  %849 = vmatpush1.msra.mxu1 %v2374_v24 }
 0x164   :  { %779 = vmatprep.subr.mxu0 %v2376_v25  ;;  %850 = vmatprep.subr.mxu1 %v2378_v26 }
 0x165   :  { %780 = vmatpush1.msra.mxu0 %v2384_v27  ;;  %851 = vmatpush1.msra.mxu1 %v2386_v28 }
 0x166   :  { %781 = vmatprep.subr.mxu0 %v2395_v30  ;;  %852 = vmatprep.subr.mxu1 %v2397_v31 }
 0x167   :  { %782 = vmatpush1.msra.mxu0 %v2401_v32  ;;  %853 = vmatpush1.msra.mxu1 %v2403_v33 }
 0x168   :  { %783 = vmatprep.subr.mxu0 %v2405_v34  ;;  %854 = vmatprep.subr.mxu1 %v2407_v35 }
 0x169   :  { %784 = vmatpush1.msra.mxu0 %v2413_v36  ;;  %855 = vmatpush1.msra.mxu1 %v2415_v37 }
 0x16a   :  { %785 = vmatprep.subr.mxu0 %v2424_v39  ;;  %856 = vmatprep.subr.mxu1 %v2426_v40 }
 0x16b   :  { %786 = vmatpush1.msra.mxu0 %v2430_v41  ;;  %857 = vmatpush1.msra.mxu1 %v2432_v42 }
 0x16c   :  { %787 = vmatprep.subr.mxu0 %v2434_v43  ;;  %858 = vmatprep.subr.mxu1 %v2436_v44 }
 0x16d   :  { %788 = vmatpush1.msra.mxu0 %v2442_v45  ;;  %859 = vmatpush1.msra.mxu1 %v2444_v46 }
 0x16e   :  { %789 = vmatprep.subr.mxu0 %v2453_v48  ;;  %860 = vmatprep.subr.mxu1 %v2455_v49 }
 0x16f   :  { %790 = vmatpush1.msra.mxu0 %v2459_v50  ;;  %861 = vmatpush1.msra.mxu1 %v3571_v2 }
 0x170   :  { %791 = vmatprep.subr.mxu0 %v3572_v62  ;;  %862 = vmatprep.subr.mxu1 %v3573_v29 }
 0x171   :  { %792 = vmatpush1.msra.mxu0 %v3574_v47  ;;  %863 = vmatpush1.msra.mxu1 %v3575_v0 }
 0x172   :  { %793 = vmatprep.subr.mxu0 %v3576_v3  ;;  %864 = vmatprep.subr.mxu1 %v3577_v63 }
 0x173   :  { %794 = vmatpush1.msra.mxu0 %v3578_v11  ;;  %865 = vmatpush1.msra.mxu1 %v3579_v52  ;;  %v3597_v11 = vld [vmem:[#allocation34_spill] sm:$0xff] }
 0x174   :  { %795 = vmatprep.subr.mxu0 %v3580_v61  ;;  %866 = vmatprep.subr.mxu1 %v3581_v58 }
 0x175   :  { %796 = vmatpush1.msra.mxu0 %v3582_v59  ;;  %867 = vmatpush1.msra.mxu1 %v3583_v53  ;;  %v3593_v53 = vld [vmem:[#allocation8_spill] sm:$0xff]  ;;  %v3595_v59 = vld [vmem:[#allocation31_spill] sm:$0xff] }
 0x176   :  { %797 = vmatprep.subr.mxu0 %v3584_v57  ;;  %868 = vmatprep.subr.mxu1 %v3585_v55  ;;  %v3594_v57 = vld [vmem:[#allocation9_spill] sm:$0xff] }
 0x177   :  { %798 = vmatpush1.msra.mxu0 %v3586_v60  ;;  %869 = vmatpush1.msra.mxu1 %v3587_v51 }
 0x178   :  { %799 = vmatprep.subr.mxu0 %v3588_v20  ;;  %870 = vmatprep.subr.mxu1 %v3589_v4  ;;  %v3596_v4 = vld [vmem:[#allocation33_spill] sm:$0xff] }
 0x179   :  { %800 = vmatpush1.msra.mxu0 %v3590_v38  ;;  %833 = vmatprep.mubr.f32.mxu0 %v3591_v56 }
 0x17a   :  { %871 = vmatpush1.msra.mxu1 %v3592_v54  ;;  %904 = vmatprep.mubr.f32.mxu1 %v3591_v56  ;;  %v3598_v54 = vld [vmem:[#allocation32_spill] sm:$0xff] }
 0x17b   :  { %933 = vmatprep.subr.mxu0 %v3593_v53  ;;  %1004 = vmatprep.subr.mxu1 %v3594_v57 }
 0x21a   :  { %v671_v55 = vpop.f32.mrf.mxu0  ;;  %v742_v60 = vpop.f32.mrf.mxu1 }
 0x21b   :  { %v747_v51 = vadd.f32 %v671_v55, %v3595_v59  ;;  %v749_v56 = vadd.f32 %v742_v60, %v3598_v54 }
 0x21c   :  { %v673_v58 = vpop.f32.mrf.mxu0  ;;  %v744_v20 = vpop.f32.mrf.mxu1 }
 0x21d   :  { %v751_v61 = vmul.f32 0.5, %v747_v51  ;;  %v748_v52 = vadd.f32 %v673_v58, %v3596_v4  ;;  %v750_v63 = vadd.f32 %v744_v20, %v3597_v11  ;;  %v753_v53 = vmul.f32 0.5, %v749_v56 }
 0x21f   :  { %2070 = vtanh.f32 %v751_v61  ;;  %v752_v38 = vmul.f32 0.5, %v748_v52 }
 0x221   :  { %2072 = vtanh.f32 %v752_v38  ;;  %v3622_v38 = vld [vmem:[#allocation37_spill] sm:$0xff] }
 0x222   :  { %2074 = vtanh.f32 %v750_v63 }
 0x223   :  { %2076 = vtanh.f32 %v753_v53 }
 0x22c   :  { %v2071_v3 = vpop.eup %2070 }
 0x22d   :  { %v757_v57 = vmul.f32 0.5, %v2071_v3  ;;  %v3621_v3 = vld [vmem:[#allocation35_spill] sm:$0xff] }
 0x22e   :  { %v2073_v0 = vpop.eup %2072 }
 0x22f   :  { %v760_v47 = vadd.f32 0.5, %v757_v57  ;;  %v758_v59 = vmul.f32 0.5, %v2073_v0  ;;  %v2075_v55 = vpop.eup %2074 }
 0x230   :  { %v2077_v11 = vpop.eup %2076 }
 0x231   :  { %v761_v29 = vadd.f32 0.5, %v758_v59  ;;  %v765_v51 = vmul.f32 %v2075_v55, %v760_v47  ;;  %v759_v63 = vmul.f32 0.5, %v2077_v11  ;;  %v3623_v55 = vld [vmem:[#allocation38_spill] sm:$0xff] }
 0x233   :  { %v764_v58 = vmul.f32 %v761_v29, %v2700_v1  ;;  %v762_v52 = vadd.f32 0.5, %v759_v63  ;;  %v3619_v1 = vld [vmem:[#allocation8_spill] sm:$0xff]  ;;  %v3620_v29 = vld [vmem:[#allocation9_spill] sm:$0xff] }
 0x235   :  { %v2774_v61 = vadd.f32 %v765_v51, %v764_v58  ;;  %v3624_v58 = vld [vmem:[#allocation36_spill] sm:$0xff] }
 0x237   :  { %2078 = vtanh.f32 %v2774_v61 }
 0x244   :  { %v2079_v54 = vpop.eup %2078 }
 0x245   :  { %v768_v60 = vmul.f32 %v2079_v54, %v762_v52 }
 0x247   :  { %834 = vmatmul.mubr.f32.vlgmr.msra.gmra.mxu0 %v768_v60  ;;  %905 = vmatmul.mubr.f32.vlgmr.msra.gmra.mxu1 %v768_v60 }
 0x248   :  { %934 = vmatpush1.msra.mxu0 %v2314_v5  ;;  %1005 = vmatpush1.msra.mxu1 %v2316_v6  ;;  %v3599_v5 = vld [vmem:[#allocation12_spill] sm:$0xff]  ;;  %v3600_v6 = vld [vmem:[#allocation13_spill] sm:$0xff] }
 0x249   :  { %935 = vmatprep.subr.mxu0 %v2318_v7  ;;  %1006 = vmatprep.subr.mxu1 %v2320_v8  ;;  %v3601_v7 = vld [vmem:[#allocation14_spill] sm:$0xff]  ;;  %v3602_v8 = vld [vmem:[#allocation15_spill] sm:$0xff] }
 0x24a   :  { %936 = vmatpush1.msra.mxu0 %v2326_v9  ;;  %1007 = vmatpush1.msra.mxu1 %v2328_v10  ;;  %v3603_v9 = vld [vmem:[#allocation16_spill] sm:$0xff]  ;;  %v3604_v10 = vld [vmem:[#allocation17_spill] sm:$0xff] }
 0x24b   :  { %937 = vmatprep.subr.mxu0 %v2337_v12  ;;  %1008 = vmatprep.subr.mxu1 %v2339_v13  ;;  %v3605_v12 = vld [vmem:[#allocation18_spill] sm:$0xff]  ;;  %v3606_v13 = vld [vmem:[#allocation19_spill] sm:$0xff] }
 0x24c   :  { %938 = vmatpush1.msra.mxu0 %v2343_v14  ;;  %1009 = vmatpush1.msra.mxu1 %v2345_v15  ;;  %v3607_v14 = vld [vmem:[#allocation20_spill] sm:$0xff]  ;;  %v3608_v15 = vld [vmem:[#allocation21_spill] sm:$0xff] }
 0x24d   :  { %939 = vmatprep.subr.mxu0 %v2347_v16  ;;  %1010 = vmatprep.subr.mxu1 %v2349_v17  ;;  %v3609_v16 = vld [vmem:[#allocation22_spill] sm:$0xff]  ;;  %v3610_v17 = vld [vmem:[#allocation23_spill] sm:$0xff] }
 0x24e   :  { %940 = vmatpush1.msra.mxu0 %v2355_v18  ;;  %1011 = vmatpush1.msra.mxu1 %v2357_v19  ;;  %v3611_v18 = vld [vmem:[#allocation24_spill] sm:$0xff]  ;;  %v3612_v19 = vld [vmem:[#allocation25_spill] sm:$0xff] }
 0x24f   :  { %941 = vmatprep.subr.mxu0 %v2366_v21  ;;  %1012 = vmatprep.subr.mxu1 %v2368_v22  ;;  %v3613_v21 = vld [vmem:[#allocation26_spill] sm:$0xff]  ;;  %v3614_v22 = vld [vmem:[#allocation27_spill] sm:$0xff] }
 0x250   :  { %942 = vmatpush1.msra.mxu0 %v2372_v23  ;;  %1013 = vmatpush1.msra.mxu1 %v2374_v24  ;;  %v3615_v23 = vld [vmem:[#allocation28_spill] sm:$0xff]  ;;  %v3616_v24 = vld [vmem:[#allocation29_spill] sm:$0xff] }
 0x251   :  { %943 = vmatprep.subr.mxu0 %v2376_v25  ;;  %1014 = vmatprep.subr.mxu1 %v2378_v26  ;;  %v3617_v25 = vmov 0.0   ;;  %v3618_v26 = vld [vmem:[#allocation30_spill] sm:$0xff] }
 0x252   :  { %944 = vmatpush1.msra.mxu0 %v2384_v27  ;;  %1015 = vmatpush1.msra.mxu1 %v2386_v28 }
 0x253   :  { %945 = vmatprep.subr.mxu0 %v2395_v30  ;;  %1016 = vmatprep.subr.mxu1 %v2397_v31 }
 0x254   :  { %946 = vmatpush1.msra.mxu0 %v2401_v32  ;;  %1017 = vmatpush1.msra.mxu1 %v2403_v33 }
 0x255   :  { %947 = vmatprep.subr.mxu0 %v2405_v34  ;;  %1018 = vmatprep.subr.mxu1 %v2407_v35 }
 0x256   :  { %948 = vmatpush1.msra.mxu0 %v2413_v36  ;;  %1019 = vmatpush1.msra.mxu1 %v2415_v37 }
 0x257   :  { %949 = vmatprep.subr.mxu0 %v2424_v39  ;;  %1020 = vmatprep.subr.mxu1 %v2426_v40 }
 0x258   :  { %950 = vmatpush1.msra.mxu0 %v2430_v41  ;;  %1021 = vmatpush1.msra.mxu1 %v2432_v42 }
 0x259   :  { %951 = vmatprep.subr.mxu0 %v2434_v43  ;;  %1022 = vmatprep.subr.mxu1 %v2436_v44 }
 0x25a   :  { %952 = vmatpush1.msra.mxu0 %v2442_v45  ;;  %1023 = vmatpush1.msra.mxu1 %v2444_v46 }
 0x25b   :  { %953 = vmatprep.subr.mxu0 %v2453_v48  ;;  %1024 = vmatprep.subr.mxu1 %v2455_v49 }
 0x25c   :  { %954 = vmatpush1.msra.mxu0 %v2459_v50  ;;  %1025 = vmatpush1.msra.mxu1 %v3571_v2 }
 0x25d   :  { %955 = vmatprep.subr.mxu0 %v3572_v62  ;;  %1026 = vmatprep.subr.mxu1 %v3599_v5 }
 0x25e   :  { %956 = vmatpush1.msra.mxu0 %v3600_v6  ;;  %1027 = vmatpush1.msra.mxu1 %v3601_v7 }
 0x25f   :  { %957 = vmatprep.subr.mxu0 %v3602_v8  ;;  %1028 = vmatprep.subr.mxu1 %v3603_v9 }
 0x260   :  { %958 = vmatpush1.msra.mxu0 %v3604_v10  ;;  %1029 = vmatpush1.msra.mxu1 %v3605_v12 }
 0x261   :  { %959 = vmatprep.subr.mxu0 %v3606_v13  ;;  %1030 = vmatprep.subr.mxu1 %v3607_v14 }
 0x262   :  { %960 = vmatpush1.msra.mxu0 %v3608_v15  ;;  %1031 = vmatpush1.msra.mxu1 %v3609_v16 }
 0x263   :  { %961 = vmatprep.subr.mxu0 %v3610_v17  ;;  %1032 = vmatprep.subr.mxu1 %v3611_v18 }
 0x264   :  { %962 = vmatpush1.msra.mxu0 %v3612_v19  ;;  %1033 = vmatpush1.msra.mxu1 %v3613_v21 }
 0x265   :  { %963 = vmatprep.subr.mxu0 %v3614_v22  ;;  %1034 = vmatprep.subr.mxu1 %v3615_v23 }
 0x266   :  { %964 = vmatpush1.msra.mxu0 %v3616_v24  ;;  %997 = vmatprep.mubr.f32.mxu0 %v3617_v25 }
 0x267   :  { %1035 = vmatpush1.msra.mxu1 %v3618_v26  ;;  %1068 = vmatprep.mubr.f32.mxu1 %v3617_v25 }
 0x268   :  { %1097 = vmatprep.subr.mxu0 %v3619_v1  ;;  %1168 = vmatprep.subr.mxu1 %v3620_v29 }
 0x307   :  { %v835_v47 = vpop.f32.mrf.mxu0  ;;  %v906_v0 = vpop.f32.mrf.mxu1 }
 0x308   :  { %v911_v53 = vadd.f32 %v835_v47, %v3621_v3  ;;  %v913_v11 = vadd.f32 %v906_v0, %v3624_v58  ;;  %v2860_v58 = vld [vmem:[#allocation4 + $0x1d8] sm:$0xff] }
 0x309   :  { %v837_v57 = vpop.f32.mrf.mxu0  ;;  %v908_v20 = vpop.f32.mrf.mxu1 }
 0x30a   :  { %v915_v4 = vmul.f32 0.5, %v911_v53  ;;  %v912_v56 = vadd.f32 %v837_v57, %v3622_v38  ;;  %v914_v51 = vadd.f32 %v908_v20, %v3623_v55  ;;  %v917_v63 = vmul.f32 0.5, %v913_v11  ;;  %v2851_v55 = vld [vmem:[#allocation4 + $0x1e0] sm:$0xff] }
 0x30b   :  { %v2863_v11 = vld [vmem:[#allocation4 + $0x1c0] sm:$0xff] }
 0x30c   :  { %2080 = vtanh.f32 %v915_v4  ;;  %v916_v59 = vmul.f32 0.5, %v912_v56 }
 0x30e   :  { %2082 = vtanh.f32 %v916_v59 }
 0x30f   :  { %2084 = vtanh.f32 %v914_v51  ;;  %v2854_v51 = vld [vmem:[#allocation4 + $0x1f0] sm:$0xff] }
 0x310   :  { %2086 = vtanh.f32 %v917_v63  ;;  %v2866_v63 = vld [vmem:[#allocation4 + $0x1d0] sm:$0xff] }
 0x319   :  { %v2081_v52 = vpop.eup %2080 }
 0x31a   :  { %v921_v54 = vmul.f32 0.5, %v2081_v52  ;;  %v2869_v52 = vld [vmem:[#allocation4 + $0x1a8] sm:$0xff] }
 0x31b   :  { %v2083_v60 = vpop.eup %2082 }
 0x31c   :  { %v924_v1 = vadd.f32 0.5, %v921_v54  ;;  %v922_v29 = vmul.f32 0.5, %v2083_v60  ;;  %v2085_v47 = vpop.eup %2084  ;;  %v2872_v54 = vld [vmem:[#allocation4 + $0x1b8] sm:$0xff]  ;;  %v2875_v60 = vld [vmem:[#allocation4 + $0x1a0] sm:$0xff] }
 0x31d   :  { %v2087_v20 = vpop.eup %2086 }
 0x31e   :  { %v925_v3 = vadd.f32 0.5, %v922_v29  ;;  %v929_v53 = vmul.f32 %v2085_v47, %v924_v1  ;;  %v923_v38 = vmul.f32 0.5, %v2087_v20  ;;  %v2878_v1 = vld [vmem:[#allocation4 + $0x1b0] sm:$0xff]  ;;  %v2881_v29 = vld [vmem:[#allocation4 + $0x188] sm:$0xff]  ;;  %v2884_v47 = vld [vmem:[#allocation4 + $0x198] sm:$0xff] }
 0x31f   :  { %v2896_v20 = vld [vmem:[#allocation4 + $0x178] sm:$0xff] }
 0x320   :  { %v928_v57 = vmul.f32 %v925_v3, %v2774_v61  ;;  %v926_v56 = vadd.f32 0.5, %v923_v38  ;;  %v2857_v61 = vld [vmem:[#allocation4 + $0x1c8] sm:$0xff]  ;;  %v2887_v3 = vld [vmem:[#allocation4 + $0x180] sm:$0xff] }
 0x321   :  { %v2899_v38 = vld [vmem:[#allocation4 + $0x160] sm:$0xff] }
 0x322   :  { %v2848_v4 = vadd.f32 %v929_v53, %v928_v57  ;;  %v2890_v53 = vld [vmem:[#allocation4 + $0x190] sm:$0xff]  ;;  %v2893_v57 = vld [vmem:[#allocation4 + $0x168] sm:$0xff] }
 0x324   :  { %2088 = vtanh.f32 %v2848_v4 }
 0x331   :  { %v2089_v0 = vpop.eup %2088 }
 0x332   :  { %v932_v59 = vmul.f32 %v2089_v0, %v926_v56  ;;  %v2902_v56 = vld [vmem:[#allocation4 + $0x170] sm:$0xff]  ;;  %v2905_v0 = vld [vmem:[#allocation4 + $0x148] sm:$0xff] }
 0x334   :  { %998 = vmatmul.mubr.f32.vlgmr.msra.gmra.mxu0 %v932_v59  ;;  %1069 = vmatmul.mubr.f32.vlgmr.msra.gmra.mxu1 %v932_v59  ;;  %v2908_v59 = vld [vmem:[#allocation4 + $0x158] sm:$0xff] }
 0x335   :  { %1098 = vmatpush1.msra.mxu0 %v2851_v55  ;;  %1169 = vmatpush1.msra.mxu1 %v2854_v51 }
 0x336   :  { %1099 = vmatprep.subr.mxu0 %v2857_v61  ;;  %1170 = vmatprep.subr.mxu1 %v2860_v58 }
 0x337   :  { %1100 = vmatpush1.msra.mxu0 %v2863_v11  ;;  %1171 = vmatpush1.msra.mxu1 %v2866_v63 }
 0x338   :  { %1101 = vmatprep.subr.mxu0 %v2869_v52  ;;  %1172 = vmatprep.subr.mxu1 %v2872_v54 }
 0x339   :  { %1102 = vmatpush1.msra.mxu0 %v2875_v60  ;;  %1173 = vmatpush1.msra.mxu1 %v2878_v1 }
 0x33a   :  { %1103 = vmatprep.subr.mxu0 %v2881_v29  ;;  %1174 = vmatprep.subr.mxu1 %v2884_v47 }
 0x33b   :  { %1104 = vmatpush1.msra.mxu0 %v2887_v3  ;;  %1175 = vmatpush1.msra.mxu1 %v2890_v53 }
 0x33c   :  { %1105 = vmatprep.subr.mxu0 %v2893_v57  ;;  %1176 = vmatprep.subr.mxu1 %v2896_v20 }
 0x33d   :  { %1106 = vmatpush1.msra.mxu0 %v2899_v38  ;;  %1177 = vmatpush1.msra.mxu1 %v2902_v56 }
 0x33e   :  { %1107 = vmatprep.subr.mxu0 %v2905_v0  ;;  %1178 = vmatprep.subr.mxu1 %v2908_v59 }
 0x33f   :  { %1108 = vmatpush1.msra.mxu0 %v2384_v27  ;;  %1179 = vmatpush1.msra.mxu1 %v2386_v28  ;;  %v2955_v27 = vld [vmem:[#allocation4 + $0x1e8] sm:$0xff]  ;;  %v2958_v28 = vld [vmem:[#allocation4 + $0x1f8] sm:$0xff] }
 0x340   :  { %1109 = vmatprep.subr.mxu0 %v2395_v30  ;;  %1180 = vmatprep.subr.mxu1 %v2397_v31  ;;  %3625 = vst [vmem:[#allocation10_spill] sm:$0xff] %v2955_v27  ;;  %3626 = vst [vmem:[#allocation11_spill] sm:$0xff] %v2958_v28 }
 0x341   :  { %1110 = vmatpush1.msra.mxu0 %v2401_v32  ;;  %1181 = vmatpush1.msra.mxu1 %v2403_v33  ;;  %v3627_v32 = vld [vmem:[#allocation39_spill] sm:$0xff] }
 0x342   :  { %1111 = vmatprep.subr.mxu0 %v2405_v34  ;;  %1182 = vmatprep.subr.mxu1 %v2407_v35 }
 0x343   :  { %1112 = vmatpush1.msra.mxu0 %v2413_v36  ;;  %1183 = vmatpush1.msra.mxu1 %v2415_v37  ;;  %v3628_v37 = vld [vmem:[#allocation41_spill] sm:$0xff] }
 0x344   :  { %1113 = vmatprep.subr.mxu0 %v2424_v39  ;;  %1184 = vmatprep.subr.mxu1 %v2426_v40 }
 0x345   :  { %1114 = vmatpush1.msra.mxu0 %v2430_v41  ;;  %1185 = vmatpush1.msra.mxu1 %v2432_v42  ;;  %v3629_v41 = vld [vmem:[#allocation42_spill] sm:$0xff] }
 0x346   :  { %1115 = vmatprep.subr.mxu0 %v2434_v43  ;;  %1186 = vmatprep.subr.mxu1 %v2436_v44  ;;  %v3630_v43 = vld [vmem:[#allocation40_spill] sm:$0xff] }
 0x347   :  { %1116 = vmatpush1.msra.mxu0 %v2442_v45  ;;  %1187 = vmatpush1.msra.mxu1 %v2444_v46 }
 0x348   :  { %1117 = vmatprep.subr.mxu0 %v2453_v48  ;;  %1188 = vmatprep.subr.mxu1 %v2455_v49 }
 0x349   :  { %1118 = vmatpush1.msra.mxu0 %v2459_v50  ;;  %1189 = vmatpush1.msra.mxu1 %v3571_v2 }
 0x34a   :  { %1119 = vmatprep.subr.mxu0 %v3572_v62  ;;  %1190 = vmatprep.subr.mxu1 %v3599_v5 }
 0x34b   :  { %1120 = vmatpush1.msra.mxu0 %v3600_v6  ;;  %1191 = vmatpush1.msra.mxu1 %v3601_v7 }
 0x34c   :  { %1121 = vmatprep.subr.mxu0 %v3602_v8  ;;  %1192 = vmatprep.subr.mxu1 %v3603_v9 }
 0x34d   :  { %1122 = vmatpush1.msra.mxu0 %v3604_v10  ;;  %1193 = vmatpush1.msra.mxu1 %v3605_v12 }
 0x34e   :  { %1123 = vmatprep.subr.mxu0 %v3606_v13  ;;  %1194 = vmatprep.subr.mxu1 %v3607_v14 }
 0x34f   :  { %1124 = vmatpush1.msra.mxu0 %v3608_v15  ;;  %1195 = vmatpush1.msra.mxu1 %v3609_v16  ;;  %v2989_v15 = vld [vmem:[#allocation4 + $0x140] sm:$0xff]  ;;  %v2992_v16 = vld [vmem:[#allocation4 + $0x150] sm:$0xff] }
 0x350   :  { %1125 = vmatprep.subr.mxu0 %v3610_v17  ;;  %1196 = vmatprep.subr.mxu1 %v3611_v18  ;;  %v2995_v17 = vld [vmem:[#allocation4 + $0x128] sm:$0xff]  ;;  %v2998_v18 = vld [vmem:[#allocation4 + $0x138] sm:$0xff] }
 0x351   :  { %1126 = vmatpush1.msra.mxu0 %v3612_v19  ;;  %1197 = vmatpush1.msra.mxu1 %v3613_v21  ;;  %v3001_v19 = vld [vmem:[#allocation4 + $0x120] sm:$0xff]  ;;  %v3004_v21 = vld [vmem:[#allocation4 + $0x130] sm:$0xff] }
 0x352   :  { %1127 = vmatprep.subr.mxu0 %v3614_v22  ;;  %1198 = vmatprep.subr.mxu1 %v3615_v23  ;;  %v3007_v22 = vld [vmem:[#allocation4 + $0x108] sm:$0xff]  ;;  %v3010_v23 = vld [vmem:[#allocation4 + $0x118] sm:$0xff] }
 0x353   :  { %1128 = vmatpush1.msra.mxu0 %v3616_v24  ;;  %1161 = vmatprep.mubr.f32.mxu0 %v3617_v25  ;;  %v3013_v24 = vld [vmem:[#allocation4 + $0x100] sm:$0xff] }
 0x354   :  { %1199 = vmatpush1.msra.mxu1 %v3618_v26  ;;  %1232 = vmatprep.mubr.f32.mxu1 %v3617_v25  ;;  %v3016_v26 = vld [vmem:[#allocation4 + $0x110] sm:$0xff] }
 0x355   :  { %1261 = vmatprep.subr.mxu0 %v2955_v27  ;;  %1332 = vmatprep.subr.mxu1 %v2958_v28 }
 0x3f4   :  { %v999_v30 = vpop.f32.mrf.mxu0  ;;  %v1070_v31 = vpop.f32.mrf.mxu1 }
 0x3f5   :  { %v1075_v33 = vadd.f32 %v999_v30, %v3627_v32  ;;  %v1077_v44 = vadd.f32 %v1070_v31, %v3630_v43  ;;  %v3022_v30 = vld [vmem:[#allocation4 + $0xf8] sm:$0xff]  ;;  %v3025_v31 = vld [vmem:[#allocation4 + $0xe0] sm:$0xff]  ;;  %v3028_v32 = vld [vmem:[#allocation4 + $0xf0] sm:$0xff] }
 0x3f6   :  { %v1001_v34 = vpop.f32.mrf.mxu0  ;;  %v1072_v35 = vpop.f32.mrf.mxu1  ;;  %v3058_v43 = vld [vmem:[#allocation4 + $0x98] sm:$0xff] }
 0x3f7   :  { %v1079_v36 = vmul.f32 0.5, %v1075_v33  ;;  %v1076_v39 = vadd.f32 %v1001_v34, %v3628_v37  ;;  %v1078_v42 = vadd.f32 %v1072_v35, %v3629_v41  ;;  %v1081_v45 = vmul.f32 0.5, %v1077_v44  ;;  %v3031_v33 = vld [vmem:[#allocation4 + $0xc8] sm:$0xff]  ;;  %v3034_v34 = vld [vmem:[#allocation4 + $0xd8] sm:$0xff]  ;;  %v3037_v35 = vld [vmem:[#allocation4 + $0xc0] sm:$0xff]  ;;  %3631 = vst [vmem:[#allocation31_spill] sm:$0xff] %v3058_v43 }
 0x3f8   :  { %v3043_v37 = vld [vmem:[#allocation4 + $0xa8] sm:$0xff]  ;;  %v3052_v41 = vld [vmem:[#allocation4 + $0xb0] sm:$0xff]  ;;  %v3061_v44 = vld [vmem:[#allocation4 + $0x80] sm:$0xff] }
 0x3f9   :  { %2090 = vtanh.f32 %v1079_v36  ;;  %v1080_v40 = vmul.f32 0.5, %v1076_v39  ;;  %v3040_v36 = vld [vmem:[#allocation4 + $0xd0] sm:$0xff]  ;;  %v3046_v39 = vld [vmem:[#allocation4 + $0xb8] sm:$0xff]  ;;  %3632 = vst [vmem:[#allocation33_spill] sm:$0xff] %v3061_v44 }
 0x3fb   :  { %2092 = vtanh.f32 %v1080_v40  ;;  %v3049_v40 = vld [vmem:[#allocation4 + $0xa0] sm:$0xff] }
 0x3fc   :  { %2094 = vtanh.f32 %v1078_v42  ;;  %v3055_v42 = vld [vmem:[#allocation4 + $0x88] sm:$0xff] }
 0x3fd   :  { %2096 = vtanh.f32 %v1081_v45  ;;  %v3064_v45 = vld [vmem:[#allocation4 + $0x90] sm:$0xff] }
 0x3fe   :  { %3633 = vst [vmem:[#allocation34_spill] sm:$0xff] %v3064_v45 }
 0x406   :  { %v2091_v46 = vpop.eup %2090 }
 0x407   :  { %v1085_v48 = vmul.f32 0.5, %v2091_v46  ;;  %v3067_v46 = vld [vmem:[#allocation4 + $0x68] sm:$0xff] }
 0x408   :  { %v2093_v49 = vpop.eup %2092  ;;  %3634 = vst [vmem:[#allocation32_spill] sm:$0xff] %v3067_v46 }
 0x409   :  { %v1088_v50 = vadd.f32 0.5, %v1085_v48  ;;  %v1086_v2 = vmul.f32 0.5, %v2093_v49  ;;  %v2095_v62 = vpop.eup %2094  ;;  %v3070_v48 = vld [vmem:[#allocation4 + $0x78] sm:$0xff]  ;;  %v3073_v49 = vld [vmem:[#allocation4 + $0x60] sm:$0xff] }
 0x40a   :  { %v2097_v9 = vpop.eup %2096  ;;  %3635 = vst [vmem:[#allocation12_spill] sm:$0xff] %v3070_v48  ;;  %3636 = vst [vmem:[#allocation13_spill] sm:$0xff] %v3073_v49 }
 0x40b   :  { %v1089_v5 = vadd.f32 0.5, %v1086_v2  ;;  %v1093_v6 = vmul.f32 %v2095_v62, %v1088_v50  ;;  %v1087_v10 = vmul.f32 0.5, %v2097_v9  ;;  %v3076_v50 = vld [vmem:[#allocation4 + $0x70] sm:$0xff]  ;;  %v3079_v2 = vld [vmem:[#allocation4 + $0x48] sm:$0xff]  ;;  %v3082_v62 = vld [vmem:[#allocation4 + $0x58] sm:$0xff] }
 0x40c   :  { %3637 = vst [vmem:[#allocation14_spill] sm:$0xff] %v3076_v50  ;;  %3638 = vst [vmem:[#allocation15_spill] sm:$0xff] %v3079_v2  ;;  %v3094_v9 = vld [vmem:[#allocation4 + $0x38] sm:$0xff] }
 0x40d   :  { %v1092_v7 = vmul.f32 %v1089_v5, %v2848_v4  ;;  %v1090_v12 = vadd.f32 0.5, %v1087_v10  ;;  %v3019_v4 = vld [vmem:[#allocation4 + $0xe8] sm:$0xff]  ;;  %3639 = vst [vmem:[#allocation16_spill] sm:$0xff] %v3082_v62  ;;  %v3085_v5 = vld [vmem:[#allocation4 + $0x40] sm:$0xff]  ;;  %3643 = vst [vmem:[#allocation20_spill] sm:$0xff] %v3094_v9 }
 0x40e   :  { %3640 = vst [vmem:[#allocation17_spill] sm:$0xff] %v3085_v5  ;;  %v3097_v10 = vld [vmem:[#allocation4 + $0x20] sm:$0xff] }
 0x40f   :  { %v2966_v8 = vadd.f32 %v1093_v6, %v1092_v7  ;;  %v3088_v6 = vld [vmem:[#allocation4 + $0x50] sm:$0xff]  ;;  %v3091_v7 = vld [vmem:[#allocation4 + $0x28] sm:$0xff]  ;;  %3644 = vst [vmem:[#allocation21_spill] sm:$0xff] %v3097_v10 }
 0x410   :  { %3641 = vst [vmem:[#allocation18_spill] sm:$0xff] %v3088_v6  ;;  %3642 = vst [vmem:[#allocation19_spill] sm:$0xff] %v3091_v7 }
 0x411   :  { %2098 = vtanh.f32 %v2966_v8 }
 0x41e   :  { %v2099_v13 = vpop.eup %2098 }
 0x41f   :  { %v1096_v14 = vmul.f32 %v2099_v13, %v1090_v12  ;;  %v3100_v12 = vld [vmem:[#allocation4 + $0x30] sm:$0xff]  ;;  %v3103_v13 = vld [vmem:[#allocation4 + $0x8] sm:$0xff] }
 0x420   :  { %3645 = vst [vmem:[#allocation22_spill] sm:$0xff] %v3100_v12  ;;  %3646 = vst [vmem:[#allocation23_spill] sm:$0xff] %v3103_v13 }
 0x421   :  { %1162 = vmatmul.mubr.f32.vlgmr.msra.gmra.mxu0 %v1096_v14  ;;  %1233 = vmatmul.mubr.f32.vlgmr.msra.gmra.mxu1 %v1096_v14  ;;  %v3106_v14 = vld [vmem:[#allocation4 + $0x18] sm:$0xff] }
 0x422   :  { %1262 = vmatpush1.msra.mxu0 %v2851_v55  ;;  %1333 = vmatpush1.msra.mxu1 %v2854_v51  ;;  %3647 = vst [vmem:[#allocation24_spill] sm:$0xff] %v3106_v14 }
 0x423   :  { %1263 = vmatprep.subr.mxu0 %v2857_v61  ;;  %1334 = vmatprep.subr.mxu1 %v2860_v58 }
 0x424   :  { %1264 = vmatpush1.msra.mxu0 %v2863_v11  ;;  %1335 = vmatpush1.msra.mxu1 %v2866_v63 }
 0x425   :  { %1265 = vmatprep.subr.mxu0 %v2869_v52  ;;  %1336 = vmatprep.subr.mxu1 %v2872_v54 }
 0x426   :  { %1266 = vmatpush1.msra.mxu0 %v2875_v60  ;;  %1337 = vmatpush1.msra.mxu1 %v2878_v1 }
 0x427   :  { %1267 = vmatprep.subr.mxu0 %v2881_v29  ;;  %1338 = vmatprep.subr.mxu1 %v2884_v47 }
 0x428   :  { %1268 = vmatpush1.msra.mxu0 %v2887_v3  ;;  %1339 = vmatpush1.msra.mxu1 %v2890_v53 }
 0x429   :  { %1269 = vmatprep.subr.mxu0 %v2893_v57  ;;  %1340 = vmatprep.subr.mxu1 %v2896_v20 }
 0x42a   :  { %1270 = vmatpush1.msra.mxu0 %v2899_v38  ;;  %1341 = vmatpush1.msra.mxu1 %v2902_v56 }
 0x42b   :  { %1271 = vmatprep.subr.mxu0 %v2905_v0  ;;  %1342 = vmatprep.subr.mxu1 %v2908_v59 }
 0x42c   :  { %1272 = vmatpush1.msra.mxu0 %v2989_v15  ;;  %1343 = vmatpush1.msra.mxu1 %v2992_v16 }
 0x42d   :  { %1273 = vmatprep.subr.mxu0 %v2995_v17  ;;  %1344 = vmatprep.subr.mxu1 %v2998_v18 }
 0x42e   :  { %1274 = vmatpush1.msra.mxu0 %v3001_v19  ;;  %1345 = vmatpush1.msra.mxu1 %v3004_v21 }
 0x42f   :  { %1275 = vmatprep.subr.mxu0 %v3007_v22  ;;  %1346 = vmatprep.subr.mxu1 %v3010_v23 }
 0x430   :  { %1276 = vmatpush1.msra.mxu0 %v3013_v24  ;;  %1347 = vmatpush1.msra.mxu1 %v3016_v26 }
 0x431   :  { %1277 = vmatprep.subr.mxu0 %v3019_v4  ;;  %1348 = vmatprep.subr.mxu1 %v3022_v30 }
 0x432   :  { %1278 = vmatpush1.msra.mxu0 %v3025_v31  ;;  %1349 = vmatpush1.msra.mxu1 %v3028_v32 }
 0x433   :  { %1279 = vmatprep.subr.mxu0 %v3031_v33  ;;  %1350 = vmatprep.subr.mxu1 %v3034_v34 }
 0x434   :  { %1280 = vmatpush1.msra.mxu0 %v3037_v35  ;;  %1351 = vmatpush1.msra.mxu1 %v3040_v36 }
 0x435   :  { %1281 = vmatprep.subr.mxu0 %v3043_v37  ;;  %1352 = vmatprep.subr.mxu1 %v3046_v39 }
 0x436   :  { %1282 = vmatpush1.msra.mxu0 %v3049_v40  ;;  %1353 = vmatpush1.msra.mxu1 %v3052_v41 }
 0x437   :  { %1283 = vmatprep.subr.mxu0 %v3055_v42  ;;  %1354 = vmatprep.subr.mxu1 %v3058_v43 }
 0x438   :  { %1284 = vmatpush1.msra.mxu0 %v3061_v44  ;;  %1355 = vmatpush1.msra.mxu1 %v3064_v45 }
 0x439   :  { %1285 = vmatprep.subr.mxu0 %v3067_v46  ;;  %1356 = vmatprep.subr.mxu1 %v3070_v48 }
 0x43a   :  { %1286 = vmatpush1.msra.mxu0 %v3073_v49  ;;  %1357 = vmatpush1.msra.mxu1 %v3076_v50  ;;  %v3652_v49 = vld [vmem:[#allocation46_spill] sm:$0xff] }
 0x43b   :  { %1287 = vmatprep.subr.mxu0 %v3079_v2  ;;  %1358 = vmatprep.subr.mxu1 %v3082_v62 }
 0x43c   :  { %1288 = vmatpush1.msra.mxu0 %v3085_v5  ;;  %1359 = vmatpush1.msra.mxu1 %v3088_v6 }
 0x43d   :  { %1289 = vmatprep.subr.mxu0 %v3091_v7  ;;  %1360 = vmatprep.subr.mxu1 %v3094_v9  ;;  %v3109_v7 = vld [vmem:[#allocation4] sm:$0xff]  ;;  %v3113_v9 = vld [vmem:[#allocation4 + $0x10] sm:$0xff] }
 0x43e   :  { %1290 = vmatpush1.msra.mxu0 %v3097_v10  ;;  %1361 = vmatpush1.msra.mxu1 %v3100_v12  ;;  %3648 = vst [vmem:[#allocation25_spill] sm:$0xff] %v3109_v7  ;;  %3649 = vst [vmem:[#allocation26_spill] sm:$0xff] %v3113_v9  ;;  %v3650_v10 = vld [vmem:[#allocation43_spill] sm:$0xff] }
 0x43f   :  { %1291 = vmatprep.subr.mxu0 %v3103_v13  ;;  %1362 = vmatprep.subr.mxu1 %v3106_v14 }
 0x440   :  { %1292 = vmatpush1.msra.mxu0 %v3109_v7  ;;  %1325 = vmatprep.mubr.f32.mxu0 %v3617_v25  ;;  %v3651_v7 = vld [vmem:[#allocation45_spill] sm:$0xff] }
 0x441   :  { %1363 = vmatpush1.msra.mxu1 %v3113_v9  ;;  %1396 = vmatprep.mubr.f32.mxu1 %v3617_v25  ;;  %v3653_v9 = vld [vmem:[#allocation44_spill] sm:$0xff] }
 0x442   :  { %1425 = vmatprep.subr.mxu0 %v2955_v27  ;;  %1496 = vmatprep.subr.mxu1 %v2958_v28 }
 0x4e1   :  { %v1163_v13 = vpop.f32.mrf.mxu0  ;;  %v1234_v12 = vpop.f32.mrf.mxu1 }
 0x4e2   :  { %v1239_v14 = vadd.f32 %v1163_v13, %v3650_v10  ;;  %v1241_v25 = vadd.f32 %v1234_v12, %v3653_v9  ;;  %v3663_v9 = vld [vmem:[#allocation17_spill] sm:$0xff]  ;;  %v3664_v12 = vld [vmem:[#allocation18_spill] sm:$0xff] }
 0x4e3   :  { %v1165_v6 = vpop.f32.mrf.mxu0  ;;  %v1236_v5 = vpop.f32.mrf.mxu1 }
 0x4e4   :  { %v1243_v62 = vmul.f32 0.5, %v1239_v14  ;;  %v1240_v2 = vadd.f32 %v1165_v6, %v3651_v7  ;;  %v1242_v48 = vadd.f32 %v1236_v5, %v3652_v49  ;;  %v1245_v27 = vmul.f32 0.5, %v1241_v25  ;;  %v3661_v5 = vld [vmem:[#allocation15_spill] sm:$0xff]  ;;  %v3662_v7 = vld [vmem:[#allocation16_spill] sm:$0xff] }
 0x4e6   :  { %2100 = vtanh.f32 %v1243_v62  ;;  %v1244_v50 = vmul.f32 0.5, %v1240_v2 }
 0x4e8   :  { %2102 = vtanh.f32 %v1244_v50 }
 0x4e9   :  { %2104 = vtanh.f32 %v1242_v48 }
 0x4ea   :  { %2106 = vtanh.f32 %v1245_v27  ;;  %v3654_v27 = vld [vmem:[#allocation31_spill] sm:$0xff] }
 0x4f3   :  { %v2101_v46 = vpop.eup %2100 }
 0x4f4   :  { %v1249_v28 = vmul.f32 0.5, %v2101_v46  ;;  %v3660_v46 = vld [vmem:[#allocation14_spill] sm:$0xff] }
 0x4f5   :  { %v2103_v45 = vpop.eup %2102 }
 0x4f6   :  { %v1252_v44 = vadd.f32 0.5, %v1249_v28  ;;  %v1250_v10 = vmul.f32 0.5, %v2103_v45  ;;  %v2105_v13 = vpop.eup %2104  ;;  %v3655_v28 = vld [vmem:[#allocation33_spill] sm:$0xff] }
 0x4f7   :  { %v2107_v49 = vpop.eup %2106  ;;  %v3659_v45 = vld [vmem:[#allocation13_spill] sm:$0xff] }
 0x4f8   :  { %v1253_v43 = vadd.f32 0.5, %v1250_v10  ;;  %v1257_v14 = vmul.f32 %v2105_v13, %v1252_v44  ;;  %v1251_v48 = vmul.f32 0.5, %v2107_v49  ;;  %v3658_v44 = vld [vmem:[#allocation12_spill] sm:$0xff]  ;;  %v3665_v10 = vld [vmem:[#allocation19_spill] sm:$0xff] }
 0x4f9   :  { %v3666_v13 = vld [vmem:[#allocation20_spill] sm:$0xff]  ;;  %v3669_v49 = vld [vmem:[#allocation23_spill] sm:$0xff] }
 0x4fa   :  { %v1256_v6 = vmul.f32 %v1253_v43, %v2966_v8  ;;  %v1254_v50 = vadd.f32 0.5, %v1251_v48  ;;  %v3656_v8 = vld [vmem:[#allocation34_spill] sm:$0xff]  ;;  %v3657_v43 = vld [vmem:[#allocation32_spill] sm:$0xff] }
 0x4fb   :  { %v3670_v48 = vld [vmem:[#allocation24_spill] sm:$0xff] }
 0x4fc   :  { %v3124_v62 = vadd.f32 %v1257_v14, %v1256_v6  ;;  %v3667_v14 = vld [vmem:[#allocation21_spill] sm:$0xff]  ;;  %v3668_v6 = vld [vmem:[#allocation22_spill] sm:$0xff] }
 0x4fe   :  { %2108 = vtanh.f32 %v3124_v62 }
 0x50b   :  { %v2109_v2 = vpop.eup %2108 }
 0x50c   :  { %v1260_v25 = vmul.f32 %v2109_v2, %v1254_v50  ;;  %v3671_v50 = vld [vmem:[#allocation25_spill] sm:$0xff]  ;;  %v3672_v2 = vmov 0.0  }
 0x50e   :  { %1326 = vmatmul.mubr.f32.vlgmr.msra.gmra.mxu0 %v1260_v25  ;;  %1397 = vmatmul.mubr.f32.vlgmr.msra.gmra.mxu1 %v1260_v25  ;;  %v3673_v25 = vld [vmem:[#allocation26_spill] sm:$0xff] }
 0x50f   :  { %1426 = vmatpush1.msra.mxu0 %v2851_v55  ;;  %1497 = vmatpush1.msra.mxu1 %v2854_v51 }
 0x510   :  { %1427 = vmatprep.subr.mxu0 %v2857_v61  ;;  %1498 = vmatprep.subr.mxu1 %v2860_v58 }
 0x511   :  { %1428 = vmatpush1.msra.mxu0 %v2863_v11  ;;  %1499 = vmatpush1.msra.mxu1 %v2866_v63 }
 0x512   :  { %1429 = vmatprep.subr.mxu0 %v2869_v52  ;;  %1500 = vmatprep.subr.mxu1 %v2872_v54 }
 0x513   :  { %1430 = vmatpush1.msra.mxu0 %v2875_v60  ;;  %1501 = vmatpush1.msra.mxu1 %v2878_v1 }
 0x514   :  { %1431 = vmatprep.subr.mxu0 %v2881_v29  ;;  %1502 = vmatprep.subr.mxu1 %v2884_v47 }
 0x515   :  { %1432 = vmatpush1.msra.mxu0 %v2887_v3  ;;  %1503 = vmatpush1.msra.mxu1 %v2890_v53 }
 0x516   :  { %1433 = vmatprep.subr.mxu0 %v2893_v57  ;;  %1504 = vmatprep.subr.mxu1 %v2896_v20 }
 0x517   :  { %1434 = vmatpush1.msra.mxu0 %v2899_v38  ;;  %1505 = vmatpush1.msra.mxu1 %v2902_v56 }
 0x518   :  { %1435 = vmatprep.subr.mxu0 %v2905_v0  ;;  %1506 = vmatprep.subr.mxu1 %v2908_v59 }
 0x519   :  { %1436 = vmatpush1.msra.mxu0 %v2989_v15  ;;  %1507 = vmatpush1.msra.mxu1 %v2992_v16 }
 0x51a   :  { %1437 = vmatprep.subr.mxu0 %v2995_v17  ;;  %1508 = vmatprep.subr.mxu1 %v2998_v18 }
 0x51b   :  { %1438 = vmatpush1.msra.mxu0 %v3001_v19  ;;  %1509 = vmatpush1.msra.mxu1 %v3004_v21 }
 0x51c   :  { %1439 = vmatprep.subr.mxu0 %v3007_v22  ;;  %1510 = vmatprep.subr.mxu1 %v3010_v23 }
 0x51d   :  { %1440 = vmatpush1.msra.mxu0 %v3013_v24  ;;  %1511 = vmatpush1.msra.mxu1 %v3016_v26 }
 0x51e   :  { %1441 = vmatprep.subr.mxu0 %v3019_v4  ;;  %1512 = vmatprep.subr.mxu1 %v3022_v30 }
 0x51f   :  { %1442 = vmatpush1.msra.mxu0 %v3025_v31  ;;  %1513 = vmatpush1.msra.mxu1 %v3028_v32 }
 0x520   :  { %1443 = vmatprep.subr.mxu0 %v3031_v33  ;;  %1514 = vmatprep.subr.mxu1 %v3034_v34 }
 0x521   :  { %1444 = vmatpush1.msra.mxu0 %v3037_v35  ;;  %1515 = vmatpush1.msra.mxu1 %v3040_v36 }
 0x522   :  { %1445 = vmatprep.subr.mxu0 %v3043_v37  ;;  %1516 = vmatprep.subr.mxu1 %v3046_v39 }
 0x523   :  { %1446 = vmatpush1.msra.mxu0 %v3049_v40  ;;  %1517 = vmatpush1.msra.mxu1 %v3052_v41 }
 0x524   :  { %1447 = vmatprep.subr.mxu0 %v3055_v42  ;;  %1518 = vmatprep.subr.mxu1 %v3654_v27 }
 0x525   :  { %1448 = vmatpush1.msra.mxu0 %v3655_v28  ;;  %1519 = vmatpush1.msra.mxu1 %v3656_v8 }
 0x526   :  { %1449 = vmatprep.subr.mxu0 %v3657_v43  ;;  %1520 = vmatprep.subr.mxu1 %v3658_v44 }
 0x527   :  { %1450 = vmatpush1.msra.mxu0 %v3659_v45  ;;  %1521 = vmatpush1.msra.mxu1 %v3660_v46  ;;  %v3678_v45 = vld [vmem:[#allocation50_spill] sm:$0xff] }
 0x528   :  { %1451 = vmatprep.subr.mxu0 %v3661_v5  ;;  %1522 = vmatprep.subr.mxu1 %v3662_v7 }
 0x529   :  { %1452 = vmatpush1.msra.mxu0 %v3663_v9  ;;  %1523 = vmatpush1.msra.mxu1 %v3664_v12  ;;  %v3674_v12 = vld [vmem:[#allocation10_spill] sm:$0xff]  ;;  %v3676_v9 = vld [vmem:[#allocation47_spill] sm:$0xff] }
 0x52a   :  { %1453 = vmatprep.subr.mxu0 %v3665_v10  ;;  %1524 = vmatprep.subr.mxu1 %v3666_v13  ;;  %v3675_v10 = vld [vmem:[#allocation11_spill] sm:$0xff] }
 0x52b   :  { %1454 = vmatpush1.msra.mxu0 %v3667_v14  ;;  %1525 = vmatpush1.msra.mxu1 %v3668_v6 }
 0x52c   :  { %1455 = vmatprep.subr.mxu0 %v3669_v49  ;;  %1526 = vmatprep.subr.mxu1 %v3670_v48  ;;  %v3677_v48 = vld [vmem:[#allocation49_spill] sm:$0xff] }
 0x52d   :  { %1456 = vmatpush1.msra.mxu0 %v3671_v50  ;;  %1489 = vmatprep.mubr.f32.mxu0 %v3672_v2 }
 0x52e   :  { %1527 = vmatpush1.msra.mxu1 %v3673_v25  ;;  %1560 = vmatprep.mubr.f32.mxu1 %v3672_v2  ;;  %v3679_v25 = vld [vmem:[#allocation48_spill] sm:$0xff] }
 0x52f   :  { %1589 = vmatprep.subr.mxu0 %v3674_v12  ;;  %1660 = vmatprep.subr.mxu1 %v3675_v10 }
 0x5ce   :  { %v1327_v13 = vpop.f32.mrf.mxu0  ;;  %v1398_v14 = vpop.f32.mrf.mxu1 }
 0x5cf   :  { %v1403_v6 = vadd.f32 %v1327_v13, %v3676_v9  ;;  %v1405_v2 = vadd.f32 %v1398_v14, %v3679_v25  ;;  %v1767_v25 = vld [vmem:[%s3421_s4 + $0x70] sm:$0xff] }
 0x5d0   :  { %v1329_v7 = vpop.f32.mrf.mxu0  ;;  %v1400_v49 = vpop.f32.mrf.mxu1 }
 0x5d1   :  { %v1407_v5 = vmul.f32 0.5, %v1403_v6  ;;  %v1404_v46 = vadd.f32 %v1329_v7, %v3677_v48  ;;  %v1406_v44 = vadd.f32 %v1400_v49, %v3678_v45  ;;  %v1409_v12 = vmul.f32 0.5, %v1405_v2  ;;  %v1768_v2 = vld [vmem:[%s3421_s4 + $0x78] sm:$0xff] }
 0x5d3   :  { %2110 = vtanh.f32 %v1407_v5  ;;  %v1408_v50 = vmul.f32 0.5, %v1404_v46 }
 0x5d5   :  { %2112 = vtanh.f32 %v1408_v50 }
 0x5d6   :  { %2114 = vtanh.f32 %v1406_v44 }
 0x5d7   :  { %2116 = vtanh.f32 %v1409_v12  ;;  %v1766_v12 = vld [vmem:[%s3421_s4 + $0x68] sm:$0xff] }
 0x5e0   :  { %v2111_v43 = vpop.eup %2110 }
 0x5e1   :  { %v1413_v10 = vmul.f32 0.5, %v2111_v43 }
 0x5e2   :  { %v2113_v8 = vpop.eup %2112 }
 0x5e3   :  { %v1416_v28 = vadd.f32 0.5, %v1413_v10  ;;  %v1414_v9 = vmul.f32 0.5, %v2113_v8  ;;  %v2115_v13 = vpop.eup %2114  ;;  %v1765_v10 = vld [vmem:[%s3421_s4 + $0x60] sm:$0xff] }
 0x5e4   :  { %v2117_v45 = vpop.eup %2116 }
 0x5e5   :  { %v1417_v27 = vadd.f32 0.5, %v1414_v9  ;;  %v1421_v6 = vmul.f32 %v2115_v13, %v1416_v28  ;;  %v1415_v44 = vmul.f32 0.5, %v2117_v45  ;;  %v1764_v9 = vld [vmem:[%s3421_s4 + $0x58] sm:$0xff]  ;;  %v1763_v13 = vld [vmem:[%s3421_s4 + $0x50] sm:$0xff] }
 0x5e6   :  { %v1759_v45 = vld [vmem:[%s3421_s4 + $0x30] sm:$0xff] }
 0x5e7   :  { %v1420_v7 = vmul.f32 %v1417_v27, %v3124_v62  ;;  %v1418_v46 = vadd.f32 0.5, %v1415_v44  ;;  %v1758_v44 = vld [vmem:[%s3421_s4 + $0x28] sm:$0xff] }
 0x5e9   :  { %v3198_v5 = vadd.f32 %v1421_v6, %v1420_v7  ;;  %v1762_v6 = vld [vmem:[%s3421_s4 + $0x48] sm:$0xff]  ;;  %v1761_v7 = vld [vmem:[%s3421_s4 + $0x40] sm:$0xff] }
 0x5eb   :  { %2118 = vtanh.f32 %v3198_v5 }
 0x5f8   :  { %v2119_v14 = vpop.eup %2118 }
 0x5f9   :  { %v1424_v49 = vmul.f32 %v2119_v14, %v1418_v46  ;;  %v1757_v46 = vld [vmem:[%s3421_s4 + $0x20] sm:$0xff]  ;;  %v1756_v14 = vld [vmem:[%s3421_s4 + $0x18] sm:$0xff] }
 0x5fb   :  { %1490 = vmatmul.mubr.f32.vlgmr.msra.gmra.mxu0 %v1424_v49  ;;  %1561 = vmatmul.mubr.f32.vlgmr.msra.gmra.mxu1 %v1424_v49  ;;  %v1755_v49 = vld [vmem:[%s3421_s4 + $0x10] sm:$0xff] }
 0x5fc   :  { %1590 = vmatpush1.msra.mxu0 %v2851_v55  ;;  %1661 = vmatpush1.msra.mxu1 %v2854_v51  ;;  %v3680_v55 = vld [vmem:[#allocation31_spill] sm:$0xff]  ;;  %v3681_v51 = vld [vmem:[#allocation33_spill] sm:$0xff] }
 0x5fd   :  { %1591 = vmatprep.subr.mxu0 %v2857_v61  ;;  %1662 = vmatprep.subr.mxu1 %v2860_v58  ;;  %v3682_v61 = vld [vmem:[#allocation34_spill] sm:$0xff]  ;;  %v3683_v58 = vld [vmem:[#allocation32_spill] sm:$0xff] }
 0x5fe   :  { %1592 = vmatpush1.msra.mxu0 %v2863_v11  ;;  %1663 = vmatpush1.msra.mxu1 %v2866_v63  ;;  %v3684_v11 = vld [vmem:[#allocation12_spill] sm:$0xff]  ;;  %v3685_v63 = vld [vmem:[#allocation13_spill] sm:$0xff] }
 0x5ff   :  { %1593 = vmatprep.subr.mxu0 %v2869_v52  ;;  %1664 = vmatprep.subr.mxu1 %v2872_v54  ;;  %v3686_v52 = vld [vmem:[#allocation14_spill] sm:$0xff]  ;;  %v3687_v54 = vld [vmem:[#allocation15_spill] sm:$0xff] }
 0x600   :  { %1594 = vmatpush1.msra.mxu0 %v2875_v60  ;;  %1665 = vmatpush1.msra.mxu1 %v2878_v1  ;;  %v3688_v60 = vld [vmem:[#allocation16_spill] sm:$0xff]  ;;  %v3689_v1 = vld [vmem:[#allocation17_spill] sm:$0xff] }
 0x601   :  { %1595 = vmatprep.subr.mxu0 %v2881_v29  ;;  %1666 = vmatprep.subr.mxu1 %v2884_v47  ;;  %v3690_v29 = vld [vmem:[#allocation18_spill] sm:$0xff]  ;;  %v3691_v47 = vld [vmem:[#allocation19_spill] sm:$0xff] }
 0x602   :  { %1596 = vmatpush1.msra.mxu0 %v2887_v3  ;;  %1667 = vmatpush1.msra.mxu1 %v2890_v53  ;;  %v3692_v3 = vld [vmem:[#allocation20_spill] sm:$0xff]  ;;  %v3693_v53 = vld [vmem:[#allocation21_spill] sm:$0xff] }
 0x603   :  { %1597 = vmatprep.subr.mxu0 %v2893_v57  ;;  %1668 = vmatprep.subr.mxu1 %v2896_v20  ;;  %v3694_v57 = vld [vmem:[#allocation22_spill] sm:$0xff]  ;;  %v3695_v20 = vld [vmem:[#allocation23_spill] sm:$0xff] }
 0x604   :  { %1598 = vmatpush1.msra.mxu0 %v2899_v38  ;;  %1669 = vmatpush1.msra.mxu1 %v2902_v56  ;;  %v3696_v38 = vld [vmem:[#allocation24_spill] sm:$0xff]  ;;  %v3697_v56 = vld [vmem:[#allocation25_spill] sm:$0xff] }
 0x605   :  { %1599 = vmatprep.subr.mxu0 %v2905_v0  ;;  %1670 = vmatprep.subr.mxu1 %v2908_v59  ;;  %v3698_v0 = vmov 0.0   ;;  %v3699_v59 = vld [vmem:[#allocation26_spill] sm:$0xff] }
 0x606   :  { %1600 = vmatpush1.msra.mxu0 %v2989_v15  ;;  %1671 = vmatpush1.msra.mxu1 %v2992_v16 }
 0x607   :  { %1601 = vmatprep.subr.mxu0 %v2995_v17  ;;  %1672 = vmatprep.subr.mxu1 %v2998_v18  ;;  %v3700_v17 = vld [vmem:[#allocation51_spill] sm:$0xff] }
 0x608   :  { %1602 = vmatpush1.msra.mxu0 %v3001_v19  ;;  %1673 = vmatpush1.msra.mxu1 %v3004_v21 }
 0x609   :  { %1603 = vmatprep.subr.mxu0 %v3007_v22  ;;  %1674 = vmatprep.subr.mxu1 %v3010_v23  ;;  %v3701_v23 = vld [vmem:[#allocation53_spill] sm:$0xff] }
 0x60a   :  { %1604 = vmatpush1.msra.mxu0 %v3013_v24  ;;  %1675 = vmatpush1.msra.mxu1 %v3016_v26 }
 0x60b   :  { %1605 = vmatprep.subr.mxu0 %v3019_v4  ;;  %1676 = vmatprep.subr.mxu1 %v3022_v30  ;;  %v3702_v4 = vld [vmem:[#allocation54_spill] sm:$0xff] }
 0x60c   :  { %1606 = vmatpush1.msra.mxu0 %v3025_v31  ;;  %1677 = vmatpush1.msra.mxu1 %v3028_v32  ;;  %v3703_v31 = vld [vmem:[#allocation52_spill] sm:$0xff] }
 0x60d   :  { %1607 = vmatprep.subr.mxu0 %v3031_v33  ;;  %1678 = vmatprep.subr.mxu1 %v3034_v34 }
 0x60e   :  { %1608 = vmatpush1.msra.mxu0 %v3037_v35  ;;  %1679 = vmatpush1.msra.mxu1 %v3040_v36 }
 0x60f   :  { %1609 = vmatprep.subr.mxu0 %v3043_v37  ;;  %1680 = vmatprep.subr.mxu1 %v3046_v39 }
 0x610   :  { %1610 = vmatpush1.msra.mxu0 %v3049_v40  ;;  %1681 = vmatpush1.msra.mxu1 %v3052_v41 }
 0x611   :  { %1611 = vmatprep.subr.mxu0 %v3055_v42  ;;  %1682 = vmatprep.subr.mxu1 %v3680_v55  ;;  %v1754_v55 = vld [vmem:[%s3421_s4 + $0x8] sm:$0xff] }
 0x612   :  { %1612 = vmatpush1.msra.mxu0 %v3681_v51  ;;  %1683 = vmatpush1.msra.mxu1 %v3682_v61  ;;  %v1753_v51 = vld [vmem:[%s3421_s4] sm:$0xff]  ;;  %v1862_v61 = vld [vmem:[%s3423_s6 + $0x78] sm:$0xff] }
 0x613   :  { %1613 = vmatprep.subr.mxu0 %v3683_v58  ;;  %1684 = vmatprep.subr.mxu1 %v3684_v11  ;;  %v1861_v58 = vld [vmem:[%s3423_s6 + $0x70] sm:$0xff]  ;;  %v1860_v11 = vld [vmem:[%s3423_s6 + $0x68] sm:$0xff] }
 0x614   :  { %1614 = vmatpush1.msra.mxu0 %v3685_v63  ;;  %1685 = vmatpush1.msra.mxu1 %v3686_v52  ;;  %v1859_v63 = vld [vmem:[%s3423_s6 + $0x60] sm:$0xff]  ;;  %v1858_v52 = vld [vmem:[%s3423_s6 + $0x58] sm:$0xff] }
 0x615   :  { %1615 = vmatprep.subr.mxu0 %v3687_v54  ;;  %1686 = vmatprep.subr.mxu1 %v3688_v60  ;;  %v1857_v54 = vld [vmem:[%s3423_s6 + $0x50] sm:$0xff]  ;;  %v1856_v60 = vld [vmem:[%s3423_s6 + $0x48] sm:$0xff] }
 0x616   :  { %1616 = vmatpush1.msra.mxu0 %v3689_v1  ;;  %1687 = vmatpush1.msra.mxu1 %v3690_v29  ;;  %v1855_v1 = vld [vmem:[%s3423_s6 + $0x40] sm:$0xff]  ;;  %v1854_v29 = vld [vmem:[%s3423_s6 + $0x38] sm:$0xff] }
 0x617   :  { %1617 = vmatprep.subr.mxu0 %v3691_v47  ;;  %1688 = vmatprep.subr.mxu1 %v3692_v3  ;;  %v1853_v47 = vld [vmem:[%s3423_s6 + $0x30] sm:$0xff]  ;;  %v1852_v3 = vld [vmem:[%s3423_s6 + $0x28] sm:$0xff] }
 0x618   :  { %1618 = vmatpush1.msra.mxu0 %v3693_v53  ;;  %1689 = vmatpush1.msra.mxu1 %v3694_v57  ;;  %v1851_v53 = vld [vmem:[%s3423_s6 + $0x20] sm:$0xff]  ;;  %v1850_v57 = vld [vmem:[%s3423_s6 + $0x18] sm:$0xff] }
 0x619   :  { %1619 = vmatprep.subr.mxu0 %v3695_v20  ;;  %1690 = vmatprep.subr.mxu1 %v3696_v38 }
 0x61a   :  { %1620 = vmatpush1.msra.mxu0 %v3697_v56  ;;  %1653 = vmatprep.mubr.f32.mxu0 %v3698_v0  ;;  %v3704_v56 = vld [vmem:[#allocation55_spill] sm:$0xff] }
 0x61b   :  { %1691 = vmatpush1.msra.mxu1 %v3699_v59  ;;  %1724 = vmatprep.mubr.f32.mxu1 %v3698_v0 }
 0x61c   :  { %1984 = vmatprep.subr.mxu0 %v3698_v0  ;;  %2019 = vmatprep.subr.mxu1 %v3698_v0 }
 0x6bb   :  { %v1491_v15 = vpop.f32.mrf.mxu0  ;;  %v1562_v16 = vpop.f32.mrf.mxu1 }
 0x6bc   :  { %v1567_v18 = vadd.f32 %v1491_v15, %v3700_v17  ;;  %v1569_v32 = vadd.f32 %v1562_v16, %v3703_v31 }
 0x6bd   :  { %v1493_v19 = vpop.f32.mrf.mxu0  ;;  %v1564_v21 = vpop.f32.mrf.mxu1 }
 0x6be   :  { %v1571_v22 = vmul.f32 0.5, %v1567_v18  ;;  %v1568_v24 = vadd.f32 %v1493_v19, %v3701_v23  ;;  %v1570_v30 = vadd.f32 %v1564_v21, %v3702_v4  ;;  %v1573_v33 = vmul.f32 0.5, %v1569_v32  ;;  %v3705_v18 = vld [vmem:[#allocation57_spill] sm:$0xff] }
 0x6c0   :  { %2120 = vtanh.f32 %v1571_v22  ;;  %v1572_v26 = vmul.f32 0.5, %v1568_v24  ;;  %v3706_v22 = vld [vmem:[#allocation58_spill] sm:$0xff]  ;;  %v3707_v24 = vld [vmem:[#allocation56_spill] sm:$0xff] }
 0x6c2   :  { %2122 = vtanh.f32 %v1572_v26 }
 0x6c3   :  { %2124 = vtanh.f32 %v1570_v30 }
 0x6c4   :  { %2126 = vtanh.f32 %v1573_v33 }
 0x6cd   :  { %v2121_v34 = vpop.eup %2120 }
 0x6ce   :  { %v1577_v35 = vmul.f32 0.5, %v2121_v34 }
 0x6cf   :  { %v2123_v36 = vpop.eup %2122 }
 0x6d0   :  { %v1580_v37 = vadd.f32 0.5, %v1577_v35  ;;  %v1578_v39 = vmul.f32 0.5, %v2123_v36  ;;  %v2125_v40 = vpop.eup %2124 }
 0x6d1   :  { %v2127_v28 = vpop.eup %2126 }
 0x6d2   :  { %v1581_v41 = vadd.f32 0.5, %v1578_v39  ;;  %v1585_v42 = vmul.f32 %v2125_v40, %v1580_v37  ;;  %v1579_v8 = vmul.f32 0.5, %v2127_v28 }
 0x6d4   :  { %v1584_v62 = vmul.f32 %v1581_v41, %v3198_v5  ;;  %v1582_v43 = vadd.f32 0.5, %v1579_v8  ;;  %v1760_v5 = vld [vmem:[%s3421_s4 + $0x38] sm:$0xff] }
 0x6d6   :  { %v3272_v27 = vadd.f32 %v1585_v42, %v1584_v62 }
 0x6d8   :  { %2128 = vtanh.f32 %v3272_v27 }
 0x6e5   :  { %v2129_v48 = vpop.eup %2128 }
 0x6e6   :  { %v1588_v50 = vmul.f32 %v2129_v48, %v1582_v43  ;;  %v1849_v43 = vld [vmem:[%s3423_s6 + $0x10] sm:$0xff]  ;;  %v1848_v48 = vld [vmem:[%s3423_s6 + $0x8] sm:$0xff] }
 0x6e8   :  { %1654 = vmatmul.mubr.f32.vlgmr.msra.gmra.mxu0 %v1588_v50  ;;  %1725 = vmatmul.mubr.f32.vlgmr.msra.gmra.mxu1 %v1588_v50  ;;  %v1948_v50 = vld [vmem:[%s3422_s5] ss:$0 sm:$0xff] }
 0x6e9   :  { %1985 = vmatpush3.msra.mxu0 %v1768_v2  ;;  %2016 = vmatprep.mubr.msk.f32.mxu0 %vm2253_vm0, %v3698_v0 }
 0x6ea   :  { %1986 = vmatprep.subr.mxu0 %v3698_v0  ;;  %2051 = vmatprep.mubr.msk.f32.mxu1 %vm2253_vm0, %v3698_v0 }
 0x6eb   :  { %1987 = vmatpush3.msra.mxu0 %v1767_v25  ;;  %2020 = vmatpush3.msra.mxu1 %v1862_v61 }
 0x6ec   :  { %1988 = vmatprep.subr.mxu0 %v3698_v0  ;;  %2021 = vmatprep.subr.mxu1 %v3698_v0 }
 0x6ed   :  { %1989 = vmatpush3.msra.mxu0 %v1766_v12  ;;  %2022 = vmatpush3.msra.mxu1 %v1861_v58 }
 0x6ee   :  { %1990 = vmatprep.subr.mxu0 %v3698_v0  ;;  %2023 = vmatprep.subr.mxu1 %v3698_v0 }
 0x6ef   :  { %1991 = vmatpush3.msra.mxu0 %v1765_v10  ;;  %2024 = vmatpush3.msra.mxu1 %v1860_v11 }
 0x6f0   :  { %1992 = vmatprep.subr.mxu0 %v3698_v0  ;;  %2025 = vmatprep.subr.mxu1 %v3698_v0 }
 0x6f1   :  { %1993 = vmatpush3.msra.mxu0 %v1764_v9  ;;  %2026 = vmatpush3.msra.mxu1 %v1859_v63  ;;  %v1949_v9 = vld [vmem:[%s3424_s7] ss:$0 sm:$0xff] }
 0x6f2   :  { %1994 = vmatprep.subr.mxu0 %v3698_v0  ;;  %2027 = vmatprep.subr.mxu1 %v3698_v0 }
 0x6f3   :  { %1995 = vmatpush3.msra.mxu0 %v1763_v13  ;;  %2028 = vmatpush3.msra.mxu1 %v1858_v52 }
 0x6f4   :  { %1996 = vmatprep.subr.mxu0 %v3698_v0  ;;  %2029 = vmatprep.subr.mxu1 %v3698_v0 }
 0x6f5   :  { %1997 = vmatpush3.msra.mxu0 %v1762_v6  ;;  %2030 = vmatpush3.msra.mxu1 %v1857_v54 }
 0x6f6   :  { %1998 = vmatprep.subr.mxu0 %v3698_v0  ;;  %2031 = vmatprep.subr.mxu1 %v3698_v0 }
 0x6f7   :  { %1999 = vmatpush3.msra.mxu0 %v1761_v7  ;;  %2032 = vmatpush3.msra.mxu1 %v1856_v60 }
 0x6f8   :  { %2000 = vmatprep.subr.mxu0 %v3698_v0  ;;  %2033 = vmatprep.subr.mxu1 %v3698_v0 }
 0x6f9   :  { %2001 = vmatpush3.msra.mxu0 %v1760_v5  ;;  %2034 = vmatpush3.msra.mxu1 %v1855_v1 }
 0x6fa   :  { %2002 = vmatprep.subr.mxu0 %v3698_v0  ;;  %2035 = vmatprep.subr.mxu1 %v3698_v0 }
 0x6fb   :  { %2003 = vmatpush3.msra.mxu0 %v1759_v45  ;;  %2036 = vmatpush3.msra.mxu1 %v1854_v29 }
 0x6fc   :  { %2004 = vmatprep.subr.mxu0 %v3698_v0  ;;  %2037 = vmatprep.subr.mxu1 %v3698_v0 }
 0x6fd   :  { %2005 = vmatpush3.msra.mxu0 %v1758_v44  ;;  %2038 = vmatpush3.msra.mxu1 %v1853_v47 }
 0x6fe   :  { %2006 = vmatprep.subr.mxu0 %v3698_v0  ;;  %2039 = vmatprep.subr.mxu1 %v3698_v0 }
 0x6ff   :  { %2007 = vmatpush3.msra.mxu0 %v1757_v46  ;;  %2040 = vmatpush3.msra.mxu1 %v1852_v3 }
 0x700   :  { %2008 = vmatprep.subr.mxu0 %v3698_v0  ;;  %2041 = vmatprep.subr.mxu1 %v3698_v0 }
 0x701   :  { %2009 = vmatpush3.msra.mxu0 %v1756_v14  ;;  %2042 = vmatpush3.msra.mxu1 %v1851_v53 }
 0x702   :  { %2010 = vmatprep.subr.mxu0 %v3698_v0  ;;  %2043 = vmatprep.subr.mxu1 %v3698_v0 }
 0x703   :  { %2011 = vmatpush3.msra.mxu0 %v1755_v49  ;;  %2044 = vmatpush3.msra.mxu1 %v1850_v57 }
 0x704   :  { %2012 = vmatprep.subr.mxu0 %v3698_v0  ;;  %2045 = vmatprep.subr.mxu1 %v3698_v0 }
 0x705   :  { %2013 = vmatpush3.msra.mxu0 %v1754_v55  ;;  %2046 = vmatpush3.msra.mxu1 %v1849_v43 }
 0x706   :  { %2014 = vmatprep.subr.mxu0 %v3698_v0  ;;  %2047 = vmatprep.subr.mxu1 %v3698_v0 }
 0x707   :  { %2015 = vmatpush3.msra.mxu0 %v1753_v51  ;;  %2048 = vmatpush3.msra.mxu1 %v1848_v48 }
 0x708   :  { %2049 = vmatprep.subr.mxu1 %v3698_v0 }
 0x7a8   :  { %v1655_v20 = vpop.f32.mrf.mxu0  ;;  %v1726_v38 = vpop.f32.mrf.mxu1 }
 0x7a9   :  { %v1731_v59 = vadd.f32 %v1655_v20, %v3704_v56  ;;  %v1733_v26 = vadd.f32 %v1726_v38, %v3707_v24 }
 0x7aa   :  { %v1657_v15 = vpop.f32.mrf.mxu0  ;;  %v1728_v16 = vpop.f32.mrf.mxu1 }
 0x7ab   :  { %v1735_v17 = vmul.f32 0.5, %v1731_v59  ;;  %v1732_v19 = vadd.f32 %v1657_v15, %v3705_v18  ;;  %v1734_v23 = vadd.f32 %v1728_v16, %v3706_v22  ;;  %v1737_v4 = vmul.f32 0.5, %v1733_v26 }
 0x7ad   :  { %2130 = vtanh.f32 %v1735_v17  ;;  %v1736_v21 = vmul.f32 0.5, %v1732_v19 }
 0x7af   :  { %2132 = vtanh.f32 %v1736_v21 }
 0x7b0   :  { %2134 = vtanh.f32 %v1734_v23 }
 0x7b1   :  { %2136 = vtanh.f32 %v1737_v4 }
 0x7ba   :  { %v2131_v30 = vpop.eup %2130 }
 0x7bb   :  { %v1741_v31 = vmul.f32 0.5, %v2131_v30 }
 0x7bc   :  { %v2133_v32 = vpop.eup %2132 }
 0x7bd   :  { %v1744_v33 = vadd.f32 0.5, %v1741_v31  ;;  %v1742_v34 = vmul.f32 0.5, %v2133_v32  ;;  %v2135_v35 = vpop.eup %2134 }
 0x7be   :  { %v2137_v41 = vpop.eup %2136 }
 0x7bf   :  { %v1745_v36 = vadd.f32 0.5, %v1742_v34  ;;  %v1749_v37 = vmul.f32 %v2135_v35, %v1744_v33  ;;  %v1743_v42 = vmul.f32 0.5, %v2137_v41 }
 0x7c1   :  { %v1748_v39 = vmul.f32 %v1745_v36, %v3272_v27  ;;  %v1746_v62 = vadd.f32 0.5, %v1743_v42  ;;  %v1847_v27 = vld [vmem:[%s3423_s6] sm:$0xff] }
 0x7c2   :  { %2050 = vmatpush3.msra.mxu1 %v1847_v27 }
 0x7c3   :  { %v1750_v40 = vadd.f32 %v1749_v37, %v1748_v39 }
 0x7c5   :  { %2138 = vtanh.f32 %v1750_v40 }
 0x7d2   :  { %v2139_v28 = vpop.eup %2138 }
 0x7d3   :  { %v1752_v8 = vmul.f32 %v2139_v28, %v1746_v62 }
 0x7d5   :  { %2017 = vmatmul.mubr.f32.vlgmr.msra.gmra.mxu0 %v1752_v8 }
 0x895   :  { %v1842_v2 = vpop.f32.mrf.mxu0 }
 0x896   :  { %v1843_v25 = vadd.f32 %v1948_v50, %v1842_v2 }
 0x897   :  { %v2018_v12 = vpop.f32.mrf.mxu0 }
 0x898   :  { %v1846_v10 = vmax.f32 %v1843_v25, 0.0 }
 0x89a   :  { %2052 = vmatmul.mubr.f32.vlgmr.msra.gmra.mxu1 %v1846_v10 }
 0x95a   :  { %v1936_v13 = vpop.f32.mrf.mxu1 }
 0x95b   :  { %v1937_v6 = vadd.f32 %v1949_v9, %v1936_v13 }
 0x95c   :  { %v2053_v7 = vpop.f32.mrf.mxu1 }
 0x95d   :  { %v1940_v5 = vmax.f32 %v1937_v6, 0.0 }
 0x95f   :  { %1941 = vst [vmem:[%s3425_s8] sm:$0xff] %v1940_v5 }
 0x960   :  { %1946 = vsyncpa [#allocation3], 1 }
 0x961   :  { %1947 = vsyncpa [#allocation5], 1 }

</bundles_post_ra>
